<compile_context>
chip_gen: v7x
topology: tpu7x:2x2x1
jax: 0.10.0
libtpu: 0.0.40
codegen_flags: <defaults>
</compile_context>

<pallas_src>
import jax
import jax.numpy as jnp
from jax import lax
from jax.experimental import pallas as pl
from jax.experimental.pallas import tpu as pltpu


def _round_up(x, m):
    return ((x + m - 1) // m) * m


def _cdiv(a, b):
    return -(-a // b)


# ----------------------------------------------------------------------------
# Fused TCN kernel factory
# ----------------------------------------------------------------------------
def make_tcn_kernel(num_layers, K, dilations, has_ds, TL, cps_in, cps_out,
                    cdtype):
    pads = [(K - 1) * d for d in dilations]

    def kernel(x_ref, *refs):
        # ---- unpack refs according to the static layer structure -----------
        idx = 0
        layer_w = []
        for i in range(num_layers):
            n = 6 if has_ds[i] else 4
            layer_w.append(refs[idx:idx + n])
            idx += n
        out_ref = refs[idx]
        idx += 1
        pbufs = refs[idx:]            # 2 staging buffers per layer (conv1, conv2)

        # ---- zero causal history at the first sequence tile of each batch --
        @pl.when(pl.program_id(1) == 0)
        def _init_history():
            for i in range(num_layers):
                pad = pads[i]
                pbufs[2 * i][0:pad, :] = jnp.zeros((pad, cps_in[i]), cdtype)
                pbufs[2 * i + 1][0:pad, :] = jnp.zeros((pad, cps_out[i]), cdtype)

        cur = x_ref[...]              # (TL, Cp_in_0) f32, current layer input

        for i in range(num_layers):
            d = dilations[i]
            pad = pads[i]
            p1 = pbufs[2 * i]         # (pad + TL, Cp_in):  [history | current]
            p2 = pbufs[2 * i + 1]     # (pad + TL, Cp_out): same for hidden h
            if has_ds[i]:
                w1_ref, b1_ref, w2_ref, b2_ref, wd_ref, bd_ref = layer_w[i]
            else:
                w1_ref, b1_ref, w2_ref, b2_ref = layer_w[i]

            cur_c = cur.astype(cdtype)

            # ---- conv1: causal dilated conv as ONE matmul -------------------
            # Current tile stored at offset `pad`; tap t reads rows [t*d, t*d+TL)
            # (aligned for t = 0 and whenever d % 8 == 0).  Last tap (t = K-1)
            # is the current tile itself -> reuse the in-register value.
            p1[pad:pad + TL, :] = cur_c
            taps1 = [p1[t * d: t * d + TL, :] for t in range(K - 1)] + [cur_c]
            lhs1 = jnp.concatenate(taps1, axis=1)            # (TL, K*Cp_in)
            h = jnp.maximum(
                jnp.dot(lhs1, w1_ref[...], preferred_element_type=jnp.float32)
                + b1_ref[...], 0.0)
            h_c = h.astype(cdtype)

            # ---- conv2 ------------------------------------------------------
            p2[pad:pad + TL, :] = h_c
            taps2 = [p2[t * d: t * d + TL, :] for t in range(K - 1)] + [h_c]
            lhs2 = jnp.concatenate(taps2, axis=1)            # (TL, K*Cp_out)
            o = jnp.maximum(
                jnp.dot(lhs2, w2_ref[...], preferred_element_type=jnp.float32)
                + b2_ref[...], 0.0)

            # ---- residual branch (identity or 1x1 conv), kept in f32 --------
            if has_ds[i]:
                res = jnp.dot(cur_c, wd_ref[...],
                              preferred_element_type=jnp.float32) + bd_ref[...]
            else:
                res = cur
            nxt = jnp.maximum(o + res, 0.0)

            # ---- carry the last `pad` rows as causal history for next tile --
            p1[0:pad, :] = cur_c[TL - pad:, :]
            p2[0:pad, :] = h_c[TL - pad:, :]

            cur = nxt

        out_ref[...] = cur.astype(out_ref.dtype)

    return kernel


# ----------------------------------------------------------------------------
# Wrapper: torch-style (N, C, L) IO (or channels_last), torch-layout params
# ----------------------------------------------------------------------------
def temporal_conv_net(x, torch_params, kernel_size, *, row_tile=512,
                      use_bf16=False, channels_last=False):
    """Forward pass of TemporalConvNet.

    x:            (N, C, L) float32, or (N, L, C) if channels_last=True.
    torch_params: list per TemporalBlock of (w1, b1, w2, b2, wd, bd) with torch
                  Conv1d layouts; wd/bd are None when in_ch == out_ch.
    use_bf16:     bf16 matmul operands (weights + staged activations) with f32
                  accumulation; bias/ReLU/residual stay f32.
    """
    assert kernel_size >= 2
    if channels_last:
        B, L, Cin0 = x.shape
        x_blc = x
    else:
        B, Cin0, L = x.shape
        x_blc = jnp.transpose(x, (0, 2, 1))          # (N, L, C)

    num_layers = len(torch_params)
    dilations = [2 ** i for i in range(num_layers)]
    out_channels = [p[0].shape[0] for p in torch_params]
    has_ds = [p[4] is not None for p in torch_params]

    K = kernel_size
    pads = [(K - 1) * d for d in dilations]
    max_pad = max(pads)

    # ---- per-layer lane-dense channel padding -------------------------------
    cps_out = [_round_up(c, 128) for c in out_channels]
    cps_in = [_round_up(Cin0, 128)] + cps_out[:-1]

    # ---- sequence tiling: multiple of 8, >= max causal pad, low dead rows ----
    TL = min(row_tile, _round_up(L, 8))
    TL = max(_round_up(TL, 8), _round_up(max_pad, 8))
    n_tiles = _cdiv(L, TL)
    TL = max(_round_up(max_pad, 8), _round_up(_cdiv(L, n_tiles), 8))
    L_pad = n_tiles * TL

    w_dtype = jnp.bfloat16 if use_bf16 else jnp.float32
    cdtype = jnp.bfloat16 if use_bf16 else jnp.float32

    # ---- build padded / reshaped weights + their BlockSpecs ------------------
    def full_spec(arr):
        nd = arr.ndim
        return pl.BlockSpec(arr.shape, lambda b, l: (0,) * nd)

    flat_args = []
    in_specs = [pl.BlockSpec((None, TL, cps_in[0]), lambda b, l: (b, l, 0))]

    for i, (w1, b1, w2, b2, wd, bd) in enumerate(torch_params):
        ci_p, co_p = cps_in[i], cps_out[i]
        co, ci, _ = w1.shape
        # (Cout, Cin, K) -> (K, Cin, Cout) -> zero-pad -> (K*Cp_in, Cp_out)
        w1k = (jnp.zeros((K, ci_p, co_p), jnp.float32)
               .at[:, :ci, :co].set(jnp.transpose(w1, (2, 1, 0)))
               .reshape(K * ci_p, co_p).astype(w_dtype))
        b1k = jnp.zeros((1, co_p), jnp.float32).at[0, :co].set(b1)
        w2k = (jnp.zeros((K, co_p, co_p), jnp.float32)
               .at[:, :co, :co].set(jnp.transpose(w2, (2, 1, 0)))
               .reshape(K * co_p, co_p).astype(w_dtype))
        b2k = jnp.zeros((1, co_p), jnp.float32).at[0, :co].set(b2)
        layer_args = [w1k, b1k, w2k, b2k]
        if wd is not None:
            wdk = (jnp.zeros((ci_p, co_p), jnp.float32)
                   .at[:ci, :co].set(jnp.transpose(wd[:, :, 0], (1, 0)))
                   .astype(w_dtype))
            bdk = jnp.zeros((1, co_p), jnp.float32).at[0, :co].set(bd)
            layer_args += [wdk, bdk]
        flat_args += layer_args
        in_specs += [full_spec(a) for a in layer_args]

    # ---- input prep: pad only when needed (channels to Cp_in_0, L to L_pad) --
    if (L_pad != L) or (cps_in[0] != Cin0):
        x_p = jnp.pad(x_blc, ((0, 0), (0, L_pad - L), (0, cps_in[0] - Cin0)))
    else:
        x_p = x_blc

    # ---- per-layer causal staging buffers ------------------------------------
    scratch_shapes = []
    for i in range(num_layers):
        pad = pads[i]
        scratch_shapes += [pltpu.VMEM((pad + TL, cps_in[i]), cdtype),
                           pltpu.VMEM((pad + TL, cps_out[i]), cdtype)]

    # ---- VMEM budget + cost estimate ------------------------------------------
    wbytes = sum(int(a.size) * a.dtype.itemsize for a in flat_args)
    sbytes = sum((pads[i] + TL) * (cps_in[i] + cps_out[i])
                 for i in range(num_layers)) * jnp.dtype(cdtype).itemsize
    iobytes = 2 * TL * cps_in[0] * 4 + 2 * TL * cps_out[-1] * 4
    vmem_est = 2 * wbytes + sbytes + iobytes         # x2: weights may double-buffer
    vmem_limit = int(min(128 * 1024 * 1024,
                         max(32 * 1024 * 1024, vmem_est + vmem_est // 2)))

    flops = 0
    for i in range(num_layers):
        f = K * cps_in[i] * cps_out[i] + K * cps_out[i] * cps_out[i]
        if has_ds[i]:
            f += cps_in[i] * cps_out[i]
        flops += 2 * B * L_pad * f
    bytes_accessed = int(B * L_pad * cps_in[0] * 4
                         + B * L_pad * cps_out[-1] * 4 + wbytes)
    cost = pl.CostEstimate(flops=int(flops), transcendentals=0,
                           bytes_accessed=bytes_accessed)

    kernel = make_tcn_kernel(num_layers, K, dilations, has_ds, TL,
                             cps_in, cps_out, cdtype)

    out_p = pl.pallas_call(
        kernel,
        out_shape=jax.ShapeDtypeStruct((B, L_pad, cps_out[-1]), jnp.float32),
        grid=(B, n_tiles),
        in_specs=in_specs,
        out_specs=pl.BlockSpec((None, TL, cps_out[-1]), lambda b, l: (b, l, 0)),
        scratch_shapes=scratch_shapes,
        compiler_params=pltpu.CompilerParams(
            dimension_semantics=("parallel", "arbitrary"),
            vmem_limit_bytes=vmem_limit),
        cost_estimate=cost,
    )(x_p, *flat_args)

    out = out_p
    if (L_pad != L) or (cps_out[-1] != out_channels[-1]):
        out = out[:, :L, :out_channels[-1]]          # strip L / channel padding
    if not channels_last:
        out = jnp.transpose(out, (0, 2, 1))          # back to (N, C, L)
    return out


# ----------------------------------------------------------------------------
# Deterministic parameter init (torch Conv1d layouts)
# ----------------------------------------------------------------------------
def init_params(key, num_inputs, num_channels, kernel_size):
    params = []
    in_ch = num_inputs
    for out_ch in num_channels:
        key, k1, k2, k3, k4, k5, k6 = jax.random.split(key, 7)
        w1 = 0.1 * jax.random.normal(k1, (out_ch, in_ch, kernel_size), jnp.float32)
        b1 = 0.1 * jax.random.normal(k2, (out_ch,), jnp.float32)
        w2 = 0.1 * jax.random.normal(k3, (out_ch, out_ch, kernel_size), jnp.float32)
        b2 = 0.1 * jax.random.normal(k4, (out_ch,), jnp.float32)
        if in_ch != out_ch:
            wd = 0.1 * jax.random.normal(k5, (out_ch, in_ch, 1), jnp.float32)
            bd = 0.1 * jax.random.normal(k6, (out_ch,), jnp.float32)
        else:
            wd, bd = None, None
        params.append((w1, b1, w2, b2, wd, bd))
        in_ch = out_ch
    return params


# ----------------------------------------------------------------------------
# Pure-JAX reference (mirrors the PyTorch module with lax.conv)
# ----------------------------------------------------------------------------
def ref_temporal_conv_net(x_ncl, torch_params, kernel_size):
    h = x_ncl
    for i, (w1, b1, w2, b2, wd, bd) in enumerate(torch_params):
        dilation = 2 ** i
        pad = (kernel_size - 1) * dilation
        L = h.shape[2]

        def conv_chomp(x, w, b):
            y = lax.conv_general_dilated(
                x, w, window_strides=(1,), padding=[(pad, pad)],
                rhs_dilation=(dilation,),
                dimension_numbers=("NCH", "OIH", "NCH"))
            y = y[:, :, :L]                       # Chomp1d
            return y + b[None, :, None]

        out = jax.nn.relu(conv_chomp(h, w1, b1))
        out = jax.nn.relu(conv_chomp(out, w2, b2))
        if wd is None:
            res = h
        else:
            res = jnp.einsum("oc,ncl->nol", wd[:, :, 0], h) + bd[None, :, None]
        h = jax.nn.relu(out + res)
    return h


# ----------------------------------------------------------------------------
if __name__ == "__main__":
    key = jax.random.PRNGKey(0)

    configs = [
        # (B, Cin, L, num_channels, K, row_tile, use_bf16, channels_last, tol)
        (2, 4, 16, [8, 8], 2, 512, False, False, 1e-4),       # single tile, f32
        (2, 4, 40, [8, 8, 6], 3, 16, False, False, 1e-4),     # cross-tile history
        (1, 4, 16, [8, 160], 2, 512, False, True, 1e-4),      # per-layer Cp 128/256
        (2, 3, 72, [16, 16, 8], 2, 24, True, False, 5e-2),    # bf16 operands
    ]
    for (B, Cin, L, num_channels, ks, row_tile, use_bf16, ch_last, tol) in configs:
        key, xkey, pkey = jax.random.split(key, 3)
        x = jax.random.normal(xkey, (B, Cin, L), jnp.float32)   # (N, C, L)
        torch_params = init_params(pkey, Cin, num_channels, ks)

        xin = jnp.transpose(x, (0, 2, 1)) if ch_last else x
        out = jax.block_until_ready(
            temporal_conv_net(xin, torch_params, ks, row_tile=row_tile,
                              use_bf16=use_bf16, channels_last=ch_last))
        ref = jax.block_until_ready(
            ref_temporal_conv_net(x, torch_params, ks))

        if ch_last:
            out = jnp.transpose(out, (0, 2, 1))
        assert out.shape == (B, num_channels[-1], L), out.shape
        err = float(jnp.max(jnp.abs(out - ref)))
        assert jnp.allclose(out, ref, atol=tol, rtol=tol), (err, use_bf16)

    print("KERNEL_OK")
</pallas_src>

<mosaic_0001>
module attributes {stable_mosaic.version = 11 : i64} {
  func.func @kernel(%arg0: i32, %arg1: i32, %arg2: memref<1x16x128xf32, #tpu.memory_space<vmem>>, %arg3: memref<256x128xf32, #tpu.memory_space<vmem>>, %arg4: memref<1x128xf32, #tpu.memory_space<vmem>>, %arg5: memref<256x128xf32, #tpu.memory_space<vmem>>, %arg6: memref<1x128xf32, #tpu.memory_space<vmem>>, %arg7: memref<128x128xf32, #tpu.memory_space<vmem>>, %arg8: memref<1x128xf32, #tpu.memory_space<vmem>>, %arg9: memref<256x128xf32, #tpu.memory_space<vmem>>, %arg10: memref<1x128xf32, #tpu.memory_space<vmem>>, %arg11: memref<256x128xf32, #tpu.memory_space<vmem>>, %arg12: memref<1x128xf32, #tpu.memory_space<vmem>>, %arg13: memref<1x16x128xf32, #tpu.memory_space<vmem>>, %arg14: memref<17x128xf32, #tpu.memory_space<vmem>>, %arg15: memref<17x128xf32, #tpu.memory_space<vmem>>, %arg16: memref<18x128xf32, #tpu.memory_space<vmem>>, %arg17: memref<18x128xf32, #tpu.memory_space<vmem>>) attributes {dimension_semantics = [#tpu.dimension_semantics<parallel>, #tpu.dimension_semantics<arbitrary>], iteration_bounds = array<i64: 2, 1>, scalar_prefetch = 0 : i64, scratch_operands = 4 : i64, tpu.core_type = #tpu.core_type<tc>, window_params = [{transform_indices = @transform_0, window_bounds = array<i64: 1, 16, 128>}, {pipeline_mode = #tpu.pipeline_mode<synchronous>, transform_indices = @transform_1, window_bounds = array<i64: 256, 128>}, {pipeline_mode = #tpu.pipeline_mode<synchronous>, transform_indices = @transform_2, window_bounds = array<i64: 1, 128>}, {pipeline_mode = #tpu.pipeline_mode<synchronous>, transform_indices = @transform_3, window_bounds = array<i64: 256, 128>}, {pipeline_mode = #tpu.pipeline_mode<synchronous>, transform_indices = @transform_4, window_bounds = array<i64: 1, 128>}, {pipeline_mode = #tpu.pipeline_mode<synchronous>, transform_indices = @transform_5, window_bounds = array<i64: 128, 128>}, {pipeline_mode = #tpu.pipeline_mode<synchronous>, transform_indices = @transform_6, window_bounds = array<i64: 1, 128>}, {pipeline_mode = #tpu.pipeline_mode<synchronous>, transform_indices = @transform_7, window_bounds = array<i64: 256, 128>}, {pipeline_mode = #tpu.pipeline_mode<synchronous>, transform_indices = @transform_8, window_bounds = array<i64: 1, 128>}, {pipeline_mode = #tpu.pipeline_mode<synchronous>, transform_indices = @transform_9, window_bounds = array<i64: 256, 128>}, {pipeline_mode = #tpu.pipeline_mode<synchronous>, transform_indices = @transform_10, window_bounds = array<i64: 1, 128>}, {transform_indices = @transform_11, window_bounds = array<i64: 1, 16, 128>}]} {
    %c0_i32 = arith.constant 0 : i32
    %0 = arith.cmpi eq, %arg1, %c0_i32 : i32
    %1 = arith.extui %0 : i1 to i32
    %c0_i32_0 = arith.constant 0 : i32
    %2 = arith.cmpi ne, %1, %c0_i32_0 : i32
    scf.if %2 {
      %cst_58 = arith.constant 0.000000e+00 : f32
      %67 = vector.broadcast %cst_58 : f32 to vector<1x128xf32>
      %c0_59 = arith.constant 0 : index
      %c0_60 = arith.constant 0 : index
      %68 = vector.load %arg14[%c0_59, %c0_60] : memref<17x128xf32, #tpu.memory_space<vmem>>, vector<1x128xf32>
      tpu.vector_store %arg14[%c0_59, %c0_60], %67 {strides = array<i32>} : memref<17x128xf32, #tpu.memory_space<vmem>>, vector<1x128xf32>,
      %cst_61 = arith.constant 0.000000e+00 : f32
      %69 = vector.broadcast %cst_61 : f32 to vector<1x128xf32>
      %c0_62 = arith.constant 0 : index
      %c0_63 = arith.constant 0 : index
      %70 = vector.load %arg15[%c0_62, %c0_63] : memref<17x128xf32, #tpu.memory_space<vmem>>, vector<1x128xf32>
      tpu.vector_store %arg15[%c0_62, %c0_63], %69 {strides = array<i32>} : memref<17x128xf32, #tpu.memory_space<vmem>>, vector<1x128xf32>,
      %cst_64 = arith.constant 0.000000e+00 : f32
      %71 = vector.broadcast %cst_64 : f32 to vector<2x128xf32>
      %c0_65 = arith.constant 0 : index
      %c0_66 = arith.constant 0 : index
      %72 = vector.load %arg16[%c0_65, %c0_66] : memref<18x128xf32, #tpu.memory_space<vmem>>, vector<2x128xf32>
      tpu.vector_store %arg16[%c0_65, %c0_66], %71 {strides = array<i32>} : memref<18x128xf32, #tpu.memory_space<vmem>>, vector<2x128xf32>,
      %cst_67 = arith.constant 0.000000e+00 : f32
      %73 = vector.broadcast %cst_67 : f32 to vector<2x128xf32>
      %c0_68 = arith.constant 0 : index
      %c0_69 = arith.constant 0 : index
      %74 = vector.load %arg17[%c0_68, %c0_69] : memref<18x128xf32, #tpu.memory_space<vmem>>, vector<2x128xf32>
      tpu.vector_store %arg17[%c0_68, %c0_69], %73 {strides = array<i32>} : memref<18x128xf32, #tpu.memory_space<vmem>>, vector<2x128xf32>,
    } else {
    }
    %c0 = arith.constant 0 : index
    %c0_1 = arith.constant 0 : index
    %c0_2 = arith.constant 0 : index
    %3 = vector.load %arg2[%c0, %c0_1, %c0_2] : memref<1x16x128xf32, #tpu.memory_space<vmem>>, vector<1x16x128xf32>
    %4 = vector.shape_cast %3 : vector<1x16x128xf32> to vector<16x128xf32>
    %c1 = arith.constant 1 : index
    %c0_3 = arith.constant 0 : index
    %5 = vector.load %arg14[%c1, %c0_3] : memref<17x128xf32, #tpu.memory_space<vmem>>, vector<16x128xf32>
    tpu.vector_store %arg14[%c1, %c0_3], %4 {strides = array<i32>} : memref<17x128xf32, #tpu.memory_space<vmem>>, vector<16x128xf32>,
    %c0_4 = arith.constant 0 : index
    %c0_5 = arith.constant 0 : index
    %6 = vector.load %arg14[%c0_4, %c0_5] : memref<17x128xf32, #tpu.memory_space<vmem>>, vector<16x128xf32>
    %7 = tpu.concatenate %6, %4 in 1 : vector<16x128xf32>, vector<16x128xf32> -> vector<16x256xf32>
    %c0_6 = arith.constant 0 : index
    %c0_7 = arith.constant 0 : index
    %8 = vector.load %arg3[%c0_6, %c0_7] : memref<256x128xf32, #tpu.memory_space<vmem>>, vector<256x128xf32>
    %cst = arith.constant dense<0.000000e+00> : vector<16x128xf32>
    %9 = tpu.matmul %7, %8, %cst {dimension_numbers = #tpu.dot_dimension_numbers<[1], [0], [0], [1], [0, 0, 1, 1], [], []>} : vector<16x256xf32>, vector<256x128xf32>, vector<16x128xf32> -> vector<16x128xf32>
    %c0_8 = arith.constant 0 : index
    %c0_9 = arith.constant 0 : index
    %10 = vector.load %arg4[%c0_8, %c0_9] : memref<1x128xf32, #tpu.memory_space<vmem>>, vector<1x128xf32>
    %11 = vector.broadcast %10 : vector<1x128xf32> to vector<16x128xf32>
    %12 = arith.addf %9, %11 : vector<16x128xf32>
    %cst_10 = arith.constant 0.000000e+00 : f32
    %13 = vector.broadcast %cst_10 : f32 to vector<16x128xf32>
    %14 = arith.maximumf %12, %13 : vector<16x128xf32>
    %c1_11 = arith.constant 1 : index
    %c0_12 = arith.constant 0 : index
    %15 = vector.load %arg15[%c1_11, %c0_12] : memref<17x128xf32, #tpu.memory_space<vmem>>, vector<16x128xf32>
    tpu.vector_store %arg15[%c1_11, %c0_12], %14 {strides = array<i32>} : memref<17x128xf32, #tpu.memory_space<vmem>>, vector<16x128xf32>,
    %c0_13 = arith.constant 0 : index
    %c0_14 = arith.constant 0 : index
    %16 = vector.load %arg15[%c0_13, %c0_14] : memref<17x128xf32, #tpu.memory_space<vmem>>, vector<16x128xf32>
    %17 = tpu.concatenate %16, %14 in 1 : vector<16x128xf32>, vector<16x128xf32> -> vector<16x256xf32>
    %c0_15 = arith.constant 0 : index
    %c0_16 = arith.constant 0 : index
    %18 = vector.load %arg5[%c0_15, %c0_16] : memref<256x128xf32, #tpu.memory_space<vmem>>, vector<256x128xf32>
    %cst_17 = arith.constant dense<0.000000e+00> : vector<16x128xf32>
    %19 = tpu.matmul %17, %18, %cst_17 {dimension_numbers = #tpu.dot_dimension_numbers<[1], [0], [0], [1], [0, 0, 1, 1], [], []>} : vector<16x256xf32>, vector<256x128xf32>, vector<16x128xf32> -> vector<16x128xf32>
    %c0_18 = arith.constant 0 : index
    %c0_19 = arith.constant 0 : index
    %20 = vector.load %arg6[%c0_18, %c0_19] : memref<1x128xf32, #tpu.memory_space<vmem>>, vector<1x128xf32>
    %21 = vector.broadcast %20 : vector<1x128xf32> to vector<16x128xf32>
    %22 = arith.addf %19, %21 : vector<16x128xf32>
    %cst_20 = arith.constant 0.000000e+00 : f32
    %23 = vector.broadcast %cst_20 : f32 to vector<16x128xf32>
    %24 = arith.maximumf %22, %23 : vector<16x128xf32>
    %c0_21 = arith.constant 0 : index
    %c0_22 = arith.constant 0 : index
    %25 = vector.load %arg7[%c0_21, %c0_22] : memref<128x128xf32, #tpu.memory_space<vmem>>, vector<128x128xf32>
    %cst_23 = arith.constant dense<0.000000e+00> : vector<16x128xf32>
    %26 = tpu.matmul %4, %25, %cst_23 {dimension_numbers = #tpu.dot_dimension_numbers<[1], [0], [0], [1], [0, 0, 1, 1], [], []>} : vector<16x128xf32>, vector<128x128xf32>, vector<16x128xf32> -> vector<16x128xf32>
    %c0_24 = arith.constant 0 : index
    %c0_25 = arith.constant 0 : index
    %27 = vector.load %arg8[%c0_24, %c0_25] : memref<1x128xf32, #tpu.memory_space<vmem>>, vector<1x128xf32>
    %28 = vector.broadcast %27 : vector<1x128xf32> to vector<16x128xf32>
    %29 = arith.addf %26, %28 : vector<16x128xf32>
    %30 = arith.addf %24, %29 : vector<16x128xf32>
    %cst_26 = arith.constant 0.000000e+00 : f32
    %31 = vector.broadcast %cst_26 : f32 to vector<16x128xf32>
    %32 = arith.maximumf %30, %31 : vector<16x128xf32>
    %33 = vector.extract_strided_slice %4 {offsets = [15, 0], sizes = [1, 128], strides = [1, 1]} : vector<16x128xf32> to vector<1x128xf32>
    %c0_27 = arith.constant 0 : index
    %c0_28 = arith.constant 0 : index
    %34 = vector.load %arg14[%c0_27, %c0_28] : memref<17x128xf32, #tpu.memory_space<vmem>>, vector<1x128xf32>
    tpu.vector_store %arg14[%c0_27, %c0_28], %33 {strides = array<i32>} : memref<17x128xf32, #tpu.memory_space<vmem>>, vector<1x128xf32>,
    %35 = vector.extract_strided_slice %14 {offsets = [15, 0], sizes = [1, 128], strides = [1, 1]} : vector<16x128xf32> to vector<1x128xf32>
    %c0_29 = arith.constant 0 : index
    %c0_30 = arith.constant 0 : index
    %36 = vector.load %arg15[%c0_29, %c0_30] : memref<17x128xf32, #tpu.memory_space<vmem>>, vector<1x128xf32>
    tpu.vector_store %arg15[%c0_29, %c0_30], %35 {strides = array<i32>} : memref<17x128xf32, #tpu.memory_space<vmem>>, vector<1x128xf32>,
    %c2 = arith.constant 2 : index
    %c0_31 = arith.constant 0 : index
    %37 = vector.load %arg16[%c2, %c0_31] : memref<18x128xf32, #tpu.memory_space<vmem>>, vector<16x128xf32>
    tpu.vector_store %arg16[%c2, %c0_31], %32 {strides = array<i32>} : memref<18x128xf32, #tpu.memory_space<vmem>>, vector<16x128xf32>,
    %c0_32 = arith.constant 0 : index
    %c0_33 = arith.constant 0 : index
    %38 = vector.load %arg16[%c0_32, %c0_33] : memref<18x128xf32, #tpu.memory_space<vmem>>, vector<16x128xf32>
    %39 = tpu.concatenate %38, %32 in 1 : vector<16x128xf32>, vector<16x128xf32> -> vector<16x256xf32>
    %c0_34 = arith.constant 0 : index
    %c0_35 = arith.constant 0 : index
    %40 = vector.load %arg9[%c0_34, %c0_35] : memref<256x128xf32, #tpu.memory_space<vmem>>, vector<256x128xf32>
    %cst_36 = arith.constant dense<0.000000e+00> : vector<16x128xf32>
    %41 = tpu.matmul %39, %40, %cst_36 {dimension_numbers = #tpu.dot_dimension_numbers<[1], [0], [0], [1], [0, 0, 1, 1], [], []>} : vector<16x256xf32>, vector<256x128xf32>, vector<16x128xf32> -> vector<16x128xf32>
    %c0_37 = arith.constant 0 : index
    %c0_38 = arith.constant 0 : index
    %42 = vector.load %arg10[%c0_37, %c0_38] : memref<1x128xf32, #tpu.memory_space<vmem>>, vector<1x128xf32>
    %43 = vector.broadcast %42 : vector<1x128xf32> to vector<16x128xf32>
    %44 = arith.addf %41, %43 : vector<16x128xf32>
    %cst_39 = arith.constant 0.000000e+00 : f32
    %45 = vector.broadcast %cst_39 : f32 to vector<16x128xf32>
    %46 = arith.maximumf %44, %45 : vector<16x128xf32>
    %c2_40 = arith.constant 2 : index
    %c0_41 = arith.constant 0 : index
    %47 = vector.load %arg17[%c2_40, %c0_41] : memref<18x128xf32, #tpu.memory_space<vmem>>, vector<16x128xf32>
    tpu.vector_store %arg17[%c2_40, %c0_41], %46 {strides = array<i32>} : memref<18x128xf32, #tpu.memory_space<vmem>>, vector<16x128xf32>,
    %c0_42 = arith.constant 0 : index
    %c0_43 = arith.constant 0 : index
    %48 = vector.load %arg17[%c0_42, %c0_43] : memref<18x128xf32, #tpu.memory_space<vmem>>, vector<16x128xf32>
    %49 = tpu.concatenate %48, %46 in 1 : vector<16x128xf32>, vector<16x128xf32> -> vector<16x256xf32>
    %c0_44 = arith.constant 0 : index
    %c0_45 = arith.constant 0 : index
    %50 = vector.load %arg11[%c0_44, %c0_45] : memref<256x128xf32, #tpu.memory_space<vmem>>, vector<256x128xf32>
    %cst_46 = arith.constant dense<0.000000e+00> : vector<16x128xf32>
    %51 = tpu.matmul %49, %50, %cst_46 {dimension_numbers = #tpu.dot_dimension_numbers<[1], [0], [0], [1], [0, 0, 1, 1], [], []>} : vector<16x256xf32>, vector<256x128xf32>, vector<16x128xf32> -> vector<16x128xf32>
    %c0_47 = arith.constant 0 : index
    %c0_48 = arith.constant 0 : index
    %52 = vector.load %arg12[%c0_47, %c0_48] : memref<1x128xf32, #tpu.memory_space<vmem>>, vector<1x128xf32>
    %53 = vector.broadcast %52 : vector<1x128xf32> to vector<16x128xf32>
    %54 = arith.addf %51, %53 : vector<16x128xf32>
    %cst_49 = arith.constant 0.000000e+00 : f32
    %55 = vector.broadcast %cst_49 : f32 to vector<16x128xf32>
    %56 = arith.maximumf %54, %55 : vector<16x128xf32>
    %57 = arith.addf %56, %32 : vector<16x128xf32>
    %cst_50 = arith.constant 0.000000e+00 : f32
    %58 = vector.broadcast %cst_50 : f32 to vector<16x128xf32>
    %59 = arith.maximumf %57, %58 : vector<16x128xf32>
    %60 = vector.extract_strided_slice %32 {offsets = [14, 0], sizes = [2, 128], strides = [1, 1]} : vector<16x128xf32> to vector<2x128xf32>
    %c0_51 = arith.constant 0 : index
    %c0_52 = arith.constant 0 : index
    %61 = vector.load %arg16[%c0_51, %c0_52] : memref<18x128xf32, #tpu.memory_space<vmem>>, vector<2x128xf32>
    tpu.vector_store %arg16[%c0_51, %c0_52], %60 {strides = array<i32>} : memref<18x128xf32, #tpu.memory_space<vmem>>, vector<2x128xf32>,
    %62 = vector.extract_strided_slice %46 {offsets = [14, 0], sizes = [2, 128], strides = [1, 1]} : vector<16x128xf32> to vector<2x128xf32>
    %c0_53 = arith.constant 0 : index
    %c0_54 = arith.constant 0 : index
    %63 = vector.load %arg17[%c0_53, %c0_54] : memref<18x128xf32, #tpu.memory_space<vmem>>, vector<2x128xf32>
    tpu.vector_store %arg17[%c0_53, %c0_54], %62 {strides = array<i32>} : memref<18x128xf32, #tpu.memory_space<vmem>>, vector<2x128xf32>,
    %c0_55 = arith.constant 0 : index
    %c0_56 = arith.constant 0 : index
    %c0_57 = arith.constant 0 : index
    %64 = vector.load %arg13[%c0_55, %c0_56, %c0_57] : memref<1x16x128xf32, #tpu.memory_space<vmem>>, vector<1x16x128xf32>
    %65 = vector.shape_cast %64 : vector<1x16x128xf32> to vector<16x128xf32>
    %66 = vector.shape_cast %59 : vector<16x128xf32> to vector<1x16x128xf32>
    tpu.vector_store %arg13[%c0_55, %c0_56, %c0_57], %66 {strides = array<i32>} : memref<1x16x128xf32, #tpu.memory_space<vmem>>, vector<1x16x128xf32>,
    return
  }
  func.func @transform_0(%arg0: i32, %arg1: i32) -> (i32, i32, i32) {
    %c0_i32 = arith.constant 0 : i32
    %c0_i32_0 = arith.constant 0 : i32
    return %arg0, %arg1, %c0_i32 : i32, i32, i32
  }
  func.func @transform_1(%arg0: i32, %arg1: i32) -> (i32, i32) {
    %c0_i32 = arith.constant 0 : i32
    %c0_i32_0 = arith.constant 0 : i32
    %c0_i32_1 = arith.constant 0 : i32
    return %c0_i32, %c0_i32_0 : i32, i32
  }
  func.func @transform_2(%arg0: i32, %arg1: i32) -> (i32, i32) {
    %c0_i32 = arith.constant 0 : i32
    %c0_i32_0 = arith.constant 0 : i32
    %c0_i32_1 = arith.constant 0 : i32
    return %c0_i32, %c0_i32_0 : i32, i32
  }
  func.func @transform_3(%arg0: i32, %arg1: i32) -> (i32, i32) {
    %c0_i32 = arith.constant 0 : i32
    %c0_i32_0 = arith.constant 0 : i32
    %c0_i32_1 = arith.constant 0 : i32
    return %c0_i32, %c0_i32_0 : i32, i32
  }
  func.func @transform_4(%arg0: i32, %arg1: i32) -> (i32, i32) {
    %c0_i32 = arith.constant 0 : i32
    %c0_i32_0 = arith.constant 0 : i32
    %c0_i32_1 = arith.constant 0 : i32
    return %c0_i32, %c0_i32_0 : i32, i32
  }
  func.func @transform_5(%arg0: i32, %arg1: i32) -> (i32, i32) {
    %c0_i32 = arith.constant 0 : i32
    %c0_i32_0 = arith.constant 0 : i32
    %c0_i32_1 = arith.constant 0 : i32
    return %c0_i32, %c0_i32_0 : i32, i32
  }
  func.func @transform_6(%arg0: i32, %arg1: i32) -> (i32, i32) {
    %c0_i32 = arith.constant 0 : i32
    %c0_i32_0 = arith.constant 0 : i32
    %c0_i32_1 = arith.constant 0 : i32
    return %c0_i32, %c0_i32_0 : i32, i32
  }
  func.func @transform_7(%arg0: i32, %arg1: i32) -> (i32, i32) {
    %c0_i32 = arith.constant 0 : i32
    %c0_i32_0 = arith.constant 0 : i32
    %c0_i32_1 = arith.constant 0 : i32
    return %c0_i32, %c0_i32_0 : i32, i32
  }
  func.func @transform_8(%arg0: i32, %arg1: i32) -> (i32, i32) {
    %c0_i32 = arith.constant 0 : i32
    %c0_i32_0 = arith.constant 0 : i32
    %c0_i32_1 = arith.constant 0 : i32
    return %c0_i32, %c0_i32_0 : i32, i32
  }
  func.func @transform_9(%arg0: i32, %arg1: i32) -> (i32, i32) {
    %c0_i32 = arith.constant 0 : i32
    %c0_i32_0 = arith.constant 0 : i32
    %c0_i32_1 = arith.constant 0 : i32
    return %c0_i32, %c0_i32_0 : i32, i32
  }
  func.func @transform_10(%arg0: i32, %arg1: i32) -> (i32, i32) {
    %c0_i32 = arith.constant 0 : i32
    %c0_i32_0 = arith.constant 0 : i32
    %c0_i32_1 = arith.constant 0 : i32
    return %c0_i32, %c0_i32_0 : i32, i32
  }
  func.func @transform_11(%arg0: i32, %arg1: i32) -> (i32, i32, i32) {
    %c0_i32 = arith.constant 0 : i32
    %c0_i32_0 = arith.constant 0 : i32
    return %arg0, %arg1, %c0_i32 : i32, i32, i32
  }
}

</mosaic_0001>

<bundles_post_ra>
// kernel: tpu_custom_call.1
= control target key start
LH: loop header
LB: loop body
LE: loop exit
PB: predicated region body
PF: predicated region fallthrough
CT: control target
= control target key end

     0   :  { %s2511_s0 = inlined_call_operand.hbm [shape: f32[2,16,128], index: 0, kind: input, shape index: {}]   ;;  %s2512_s1 = inlined_call_operand.hbm [shape: f32[256,128], index: 1, kind: input, shape index: {}]   ;;  %s2513_s2 = inlined_call_operand.vmem [shape: f32[1,128], index: 2, kind: input, shape index: {}]   ;;  %s2514_s3 = inlined_call_operand.hbm [shape: f32[256,128], index: 3, kind: input, shape index: {}]   ;;  %s2515_s4 = inlined_call_operand.vmem [shape: f32[1,128], index: 4, kind: input, shape index: {}]   ;;  %s2516_s5 = inlined_call_operand.hbm [shape: f32[128,128], index: 5, kind: input, shape index: {}]   ;;  %s2517_s6 = inlined_call_operand.vmem [shape: f32[1,128], index: 6, kind: input, shape index: {}]   ;;  %s2518_s7 = inlined_call_operand.hbm [shape: f32[256,128], index: 7, kind: input, shape index: {}]   ;;  %s2519_s8 = inlined_call_operand.vmem [shape: f32[1,128], index: 8, kind: input, shape index: {}]   ;;  %s2520_s9 = inlined_call_operand.hbm [shape: f32[256,128], index: 9, kind: input, shape index: {}]   ;;  %s2521_s10 = inlined_call_operand.vmem [shape: f32[1,128], index: 10, kind: input, shape index: {}]   ;;  %s2522_s11 = inlined_call_operand.hbm [shape: f32[2,16,128], index: 11, kind: output, shape index: {}]  }
   0x1   :  { %2530 = sst [smem:[#allocation24_spill]] %s2512_s1 }
   0x2   :  { %2531 = sst [smem:[#allocation25_spill]] %s2517_s6 }
   0x3   :  { %2532 = sst [smem:[#allocation26_spill]] %s2519_s8 }
   0x4   :  { %2533 = sst [smem:[#allocation27_spill]] %s2521_s10 }
   0x5   :  { %2534 = sst [smem:[#allocation28_spill]] %s2522_s11 }
   0x6   :  { %16 = vsyncpa [#allocation7], 0 }
   0x7   :  { %18 = vsyncpa [#allocation7 + $0x1], 0 }
   0x8   :  { %19 = vsyncpa [#allocation10], 0 }
   0x9   :  { %20 = vsyncpa [#allocation13], 0 }
   0xa   :  { %21 = vsyncpa [#allocation16], 0 }
   0xb   :  { %22 = vsyncpa [#allocation8], 0 }
   0xc   :  { %24 = vsyncpa [#allocation8 + $0x1], 0  ;;  %s2120_s17 = smov 0   ;;  %s2122_s18 = smov 0  }
   0xd   :  { %s2124_s19 = smov 0   ;;  %s2126_s20 = smov 0  }
   0xe   :  { %s2128_s21 = smov 0   ;;  %s2130_s22 = smov 0  }
   0xf LB: > { %2535 = sst [smem:[#allocation23_spill]] %s2038_s20  ;;  %s2523_s23 = sadd.s32 4294967295, %s2046_s22   ;;  %s2046_s22 = sphi %s2130_s22, %s30_s22   ;;  %s2042_s21 = sphi %s2128_s21, %s2563_s21   ;;  %s2038_s20 = sphi %s2126_s20, %s2562_s20   ;;  %s2034_s19 = sphi %s2124_s19, %s2561_s19   ;;  %s2030_s18 = sphi %s2122_s18, %s2560_s18   ;;  %s2026_s17 = sphi %s2120_s17, %s2559_s17  }
  0x10   : > { %p1253_p0 = scmp.ge.s32.totalorder %s2046_s22, 1  ;;  %p2154_p1 = scmp.eq.s32.totalorder %s2523_s23, 0 }
  0x11   : > { %p313_p2 = scmp.lt.s32.totalorder %s2046_s22, 3  ;;  %s2048_s26 = smov [#allocation9]  }
  0x12   : > { %s2536_s24 = scalar_select %p2154_p1, 1, 0 }
  0x13   : > { %p2159_p3 = pnand %p1253_p0, %p313_p2  ;;  %s325_s27 = sshll.u32 %s2048_s26, 4  ;;  %s2163_s27 = int_to_ptr.vmem [resolvable:$true] %s325_s27 }
  0x14   : > { %s2049_s29 = smov [#allocation12]   ;;  %s2050_s12 = smov [#allocation11]  }
  0x15   : > { %s2537_s25 = scalar_select %p2159_p3, 1, 0 }
  0x16   : > { %p1688_p4 = pneg %p2159_p3  ;;  %s357_s30 = sshll.u32 %s2049_s29, 4  ;;  %s2174_s30 = int_to_ptr.vmem [resolvable:$true] %s357_s30 }
  0x17   : > { %s2176_s13 = sshll.u32 %s2050_s12, 4  ;;  %s2539_s1 = sld [smem:[#allocation24_spill]]  ;;  %s342_s13 = int_to_ptr.vmem [resolvable:$true] %s2176_s13 }
  0x18   : > { %p2170_p6 = pnand %p1688_p4, %p2154_p1 }
  0x1a   : > { %p2186_p8 = pneg %p2170_p6 }
  0x1d   : > { %s1782_s16 = scalar_lea.hbm %s2539_s1, 4096 }
  0x1e   : > { %p1783_p7 = scmp.ne.s32.totalorder %s2539_s1, %s1782_s16  ;;  %p1789_p11 = scmp.lt.u32.totalorder %s1782_s16, %s2539_s1 }
  0x20   : > { %p1785_p9 = pnand %p2186_p8, %p1783_p7 }
  0x22   : > { %p1786_p10 = pneg %p1785_p9 }
  0x24   : > { %p1791_p12 = pnand %p1789_p11, %p1786_p10 }
  0x26   : > { %1794 = shalt.err (!%p1791_p12)
}
  0x27   : > { %s1795_s23 = scalar_lea.vmem %s2163_s27, 4096  ;;  %p1803_p4 = scmp.lt.s32.totalorder %s2163_s27, %s2163_s27 }
  0x28   : > { %p1796_p13 = scmp.ne.s32.totalorder %s2163_s27, %s1795_s23  ;;  %p1804_p5 = scmp.lt.s32.totalorder %s1795_s23, %s1795_s23 }
  0x2a   : > { %p1798_p0 = pnand %p1796_p13, %p2186_p8  ;;  %p1805_p7 = por %p1804_p5, %p1803_p4 }
  0x2c   : > { %p1799_p2 = pneg %p1798_p0 }
  0x2e   : > { %p1806_p9 = pnand %p1805_p7, %p1799_p2 }
  0x30   : > { %1809 = shalt.err (!%p1806_p9)
}
  0x31   : > { %s2528_s14 = smov 128   ;;  %s2052_s15 = smov 8  }
  0x32   : > { %1691 = dma.hbm_to_vmem [thread:$0]  (!%p2170_p6), %s2539_s1, 4096, %s2163_s27, [#allocation10], %s2528_s14, %s2528_s14, %s2052_s15  }
  0x33   : > { %s1810_s23 = scalar_lea.hbm %s2516_s5, 2048 }
  0x34   : > { %p1811_p5 = scmp.ne.s32.totalorder %s2516_s5, %s1810_s23  ;;  %p1817_p12 = scmp.lt.u32.totalorder %s1810_s23, %s2516_s5 }
  0x36   : > { %p1813_p10 = pnand %p1811_p5, %p2186_p8 }
  0x38   : > { %p1814_p11 = pneg %p1813_p10 }
  0x3a   : > { %p1819_p13 = pnand %p1817_p12, %p1814_p11 }
  0x3c   : > { %1822 = shalt.err (!%p1819_p13)
}
  0x3d   : > { %s1823_s27 = scalar_lea.vmem %s2174_s30, 2048  ;;  %p1831_p7 = scmp.lt.s32.totalorder %s2174_s30, %s2174_s30 }
  0x3e   : > { %p1824_p0 = scmp.ne.s32.totalorder %s2174_s30, %s1823_s27  ;;  %p1832_p9 = scmp.lt.s32.totalorder %s1823_s27, %s1823_s27 }
  0x40   : > { %p1826_p2 = pnand %p1824_p0, %p2186_p8  ;;  %p1833_p5 = por %p1832_p9, %p1831_p7 }
  0x42   : > { %p1827_p4 = pneg %p1826_p2 }
  0x44   : > { %p1834_p10 = pnand %p1833_p5, %p1827_p4 }
  0x46   : > { %1837 = shalt.err (!%p1834_p10)
}
  0x47   : > { %1697 = dma.hbm_to_vmem [thread:$0]  (!%p2170_p6), %s2516_s5, 2048, %s2174_s30, [#allocation13], %s2528_s14, %s2528_s14, %s2052_s15  }
  0x48   : > { %s1838_s16 = scalar_lea.hbm %s2514_s3, 4096 }
  0x49   : > { %p1839_p11 = scmp.ne.s32.totalorder %s2514_s3, %s1838_s16  ;;  %p1845_p0 = scmp.lt.u32.totalorder %s1838_s16, %s2514_s3 }
  0x4b   : > { %p1841_p12 = pnand %p1839_p11, %p2186_p8 }
  0x4d   : > { %p1842_p13 = pneg %p1841_p12 }
  0x4f   : > { %p1847_p2 = pnand %p1845_p0, %p1842_p13 }
  0x51   : > { %1850 = shalt.err (!%p1847_p2)
}
  0x52   : > { %s1851_s27 = scalar_lea.vmem %s342_s13, 4096  ;;  %p1859_p5 = scmp.lt.s32.totalorder %s342_s13, %s342_s13 }
  0x53   : > { %p1852_p4 = scmp.ne.s32.totalorder %s342_s13, %s1851_s27  ;;  %p1860_p10 = scmp.lt.s32.totalorder %s1851_s27, %s1851_s27 }
  0x55   : > { %p1854_p7 = pnand %p1852_p4, %p2186_p8  ;;  %p1861_p3 = por %p1860_p10, %p1859_p5 }
  0x57   : > { %p1855_p9 = pneg %p1854_p7 }
  0x59   : > { %p1862_p1 = pnand %p1861_p3, %p1855_p9 }
  0x5b   : > { %1865 = shalt.err (!%p1862_p1)
}
  0x5c   : > { %1694 = dma.hbm_to_vmem [thread:$0]  (!%p2170_p6), %s2514_s3, 4096, %s342_s13, [#allocation10], %s2528_s14, %s2528_s14, %s2052_s15  }
  0x5d   : > { %s2053_s8 = smov [#allocation14]   ;;  %s2054_s20 = smov [#allocation15]  }
  0x5e   : > { %s373_s10 = sshll.u32 %s2053_s8, 4  ;;  %s389_s16 = sshll.u32 %s2054_s20, 4  ;;  %s374_s10 = int_to_ptr.vmem [resolvable:$true] %s373_s10  ;;  %s390_s16 = int_to_ptr.vmem [resolvable:$true] %s389_s16 }
  0x5f   : > { %s1866_s12 = scalar_lea.hbm %s2518_s7, 4096 }
  0x60   : > { %p1867_p1 = scmp.ne.s32.totalorder %s2518_s7, %s1866_s12  ;;  %p1873_p12 = scmp.lt.u32.totalorder %s1866_s12, %s2518_s7 }
  0x62   : > { %p1869_p3 = pnand %p1867_p1, %p2186_p8 }
  0x64   : > { %p1870_p11 = pneg %p1869_p3 }
  0x66   : > { %p1875_p13 = pnand %p1873_p12, %p1870_p11 }
  0x68   : > { %1878 = shalt.err (!%p1875_p13)
}
  0x69   : > { %s1879_s13 = scalar_lea.vmem %s374_s10, 4096  ;;  %p1887_p7 = scmp.lt.s32.totalorder %s374_s10, %s374_s10 }
  0x6a   : > { %p1880_p0 = scmp.ne.s32.totalorder %s374_s10, %s1879_s13  ;;  %p1888_p9 = scmp.lt.s32.totalorder %s1879_s13, %s1879_s13 }
  0x6c   : > { %p1882_p2 = pnand %p1880_p0, %p2186_p8  ;;  %p1889_p5 = por %p1888_p9, %p1887_p7 }
  0x6e   : > { %p1883_p4 = pneg %p1882_p2 }
  0x70   : > { %p1890_p10 = pnand %p1889_p5, %p1883_p4 }
  0x72   : > { %1893 = shalt.err (!%p1890_p10)
}
  0x73   : > { %1700 = dma.hbm_to_vmem [thread:$0]  (!%p2170_p6), %s2518_s7, 4096, %s374_s10, [#allocation13], %s2528_s14, %s2528_s14, %s2052_s15  }
  0x74   : > { %s1894_s26 = scalar_lea.hbm %s2520_s9, 4096 }
  0x75   : > { %p1895_p1 = scmp.ne.s32.totalorder %s2520_s9, %s1894_s26  ;;  %p1901_p12 = scmp.lt.u32.totalorder %s1894_s26, %s2520_s9 }
  0x77   : > { %p1897_p3 = pnand %p1895_p1, %p2186_p8 }
  0x79   : > { %p1898_p11 = pneg %p1897_p3 }
  0x7b   : > { %p1903_p13 = pnand %p1901_p12, %p1898_p11 }
  0x7d   : > { %1906 = shalt.err (!%p1903_p13)
}
  0x7e   : > { %s1907_s30 = scalar_lea.vmem %s390_s16, 4096  ;;  %p1915_p7 = scmp.lt.s32.totalorder %s390_s16, %s390_s16 }
  0x7f   : > { %p1908_p0 = scmp.ne.s32.totalorder %s390_s16, %s1907_s30  ;;  %p1916_p9 = scmp.lt.s32.totalorder %s1907_s30, %s1907_s30 }
  0x81   : > { %p1910_p2 = pnand %p1908_p0, %p2186_p8  ;;  %p1917_p5 = por %p1916_p9, %p1915_p7 }
  0x83   : > { %p1911_p4 = pneg %p1910_p2 }
  0x85   : > { %p1918_p10 = pnand %p1917_p5, %p1911_p4 }
  0x87   : > { %1921 = shalt.err (!%p1918_p10)
}
  0x88   : > { %1703 = dma.hbm_to_vmem [thread:$0]  (!%p2170_p6), %s2520_s9, 4096, %s390_s16, [#allocation16], %s2528_s14, %s2528_s14, %s2052_s15  }
  0x89   : > { %s1252_s11 = sadd.s32 4294967294, %s2046_s22   ;;  %s42_s28 = sadd.s32 1, %s2042_s21 }
  0x8a   : > { %s51_s1 = sadd.s32 1, %s2034_s19  ;;  %p44_p8 = scmp.ge.s32.totalorder %s42_s28, 2 }
  0x8b   : > { %p58_p1 = scmp.ne.s32.totalorder %s2034_s19, %s2030_s18  ;;  %p59_p3 = scmp.eq.s32.totalorder %s2046_s22, 0 }
  0x8c   : > { %p64_p11 = scmp.ne.s32.totalorder %s2030_s18, %s2026_s17  ;;  %s2565_s28 = smov (%p44_p8, %s42_s28), 0 }
  0x8d   : > { %p2310_p12 = por %p59_p3, %p58_p1  ;;  %p2542_p13 = scmp.ne.s32.totalorder %s2536_s24, 0 }
  0x8e   : > { %s46_s8 = ssub.s32 %s2042_s21, %s2565_s28  ;;  %s2544_s20 = sadd.s32 4294967295, %s2046_s22  }
  0x8f   : > { %p2316_p6 = por %p2542_p13, %p64_p11  ;;  %p300_p0 = scmp.eq.s32.totalorder %s2544_s20, 1 }
  0x90   : > { %p49_p2 = scmp.eq.s32.totalorder %s46_s8, 0  ;;  %p306_p4 = scmp.eq.s32.totalorder %s1252_s11, 1 }
  0x91   : > { %p2324_p7 = por %p300_p0, %p58_p1  ;;  %p1717_p9 = scmp.lt.s32.totalorder %s2046_s22, 2 }
  0x92   : > { %s2330_s29 = scalar_select %p49_p2, %s2034_s19, %s51_s1  }
  0x93   : > { %s2545_s26 = scalar_select %p2324_p7, 1, 0 }
  0x94   : > { %p2332_p5 = por %p306_p4, %p64_p11  ;;  %s406_s23 = sand.u32 1, %s2034_s19  }
  0x95   : > { %s1260_s27 = sshll.u32 %s406_s23, 4  ;;  %s1281_s30 = sshll.u32 %s2042_s21, 8 }
  0x96   : > { %s2546_s12 = scalar_select %p2332_p5, 1, 0 }
  0x97   : > { %s2341_s20 = scalar_lea.hbm %s2511_s0, %s1281_s30  ;;  %s410_s11 = scalar_lea.vmem [#allocation6], %s1260_s27 }
  0x98   : > { %s419_s8 = sshll.u32 %s410_s11, 4  ;;  %p2347_p10 = pnand %p1717_p9, %p2310_p12  ;;  %s2343_s8 = int_to_ptr.vmem [resolvable:$true] %s419_s8 }
  0x99   : > { %s2351_s14 = scalar_lea.sflag [#allocation7], %s406_s23  ;;  %s1922_s10 = scalar_lea.hbm %s2341_s20, 256 }
  0x9a   : > { %p1923_p8 = scmp.ne.s32.totalorder %s2341_s20, %s1922_s10  ;;  %p1924_p1 = pneg %p2347_p10 }
  0x9b   : > { %s1927_s6 = scalar_lea.hbm %s2511_s0, 512  ;;  %p1928_p12 = scmp.lt.u32.totalorder %s2341_s20, %s2511_s0 }
  0x9c   : > { %p1925_p3 = pnand %p1924_p1, %p1923_p8  ;;  %p1929_p13 = scmp.lt.u32.totalorder %s1927_s6, %s1922_s10 }
  0x9d   : > { %p1931_p2 = scmp.lt.u32.totalorder %s1922_s10, %s2341_s20 }
  0x9e   : > { %p1926_p11 = pneg %p1925_p3  ;;  %p1930_p0 = por %p1929_p13, %p1928_p12 }
  0xa0   : > { %p1932_p4 = por %p1931_p2, %p1930_p0 }
  0xa2   : > { %p1933_p9 = pnand %p1932_p4, %p1926_p11 }
  0xa4   : > { %1936 = shalt.err (!%p1933_p9)
}
  0xa5   : > { %s1937_s23 = scalar_lea.vmem %s2343_s8, 256  ;;  %s2055_s27 = smov [#allocation6]  }
  0xa6   : > { %p1938_p8 = scmp.ne.s32.totalorder %s2343_s8, %s1937_s23  ;;  %s1942_s30 = sshll.u32 %s2055_s27, 4  ;;  %s1943_s30 = int_to_ptr.vmem [resolvable:$false] %s1942_s30 }
  0xa7   : > { %s1944_s13 = scalar_lea.vmem %s1943_s30, 512  ;;  %p1945_p7 = scmp.lt.s32.totalorder %s2343_s8, %s1943_s30 }
  0xa8   : > { %p1940_p3 = pnand %p1938_p8, %p1924_p1  ;;  %p1946_p12 = scmp.lt.s32.totalorder %s1944_s13, %s1937_s23 }
  0xaa   : > { %p1941_p5 = pneg %p1940_p3  ;;  %p1947_p13 = por %p1946_p12, %p1945_p7 }
  0xac   : > { %p1948_p0 = pnand %p1947_p13, %p1941_p5 }
  0xae   : > { %1951 = shalt.err (!%p1948_p0)
}
  0xaf   : > { %s2548_s10 = smov 128   ;;  %p2549_p1 = scmp.ne.s32.totalorder %s2537_s25, 0 }
  0xb0   : > { %1707 = dma.hbm_to_vmem [thread:$0]  (!%p2347_p10), %s2341_s20, 256, %s2343_s8, %s2351_s14, %s2548_s10, %s2548_s10, %s2052_s15  }
  0xb1   : > { %431 = sbr.rel (%p2549_p1) target bundleno = 1154 (0x482), region = 64  ;;  %s2385_s6 = sand.u32 (!%p2549_p1), 1, %s2030_s18  }
  0xb2   : > { %s1264_s11 = sshll.u32 (!%p2549_p1), %s2385_s6, 4  ;;  %s434_s23 = scalar_lea.sflag (!%p2549_p1), [#allocation7], %s2385_s6 }
  0xb3   : > { %s2391_s1 = scalar_lea.vmem (!%p2549_p1), [#allocation6], %s1264_s11 }
  0xb8   : > { %2005 = dma.done.wait (%p2316_p6), %s434_s23, 256  }
  0xb9   : > { %2007 = vsyncadd (%p2316_p6), %s434_s23, 4294967040  ;;  %p2550_p7 = scmp.ne.s32.totalorder %s2536_s24, 0 }
  0xbb   : > { %2009 = dma.done.wait (%p2550_p7), [#allocation10], 8192  }
  0xbc   : > { %2011 = vsyncadd (%p2550_p7), [#allocation10], 4294959104 }
  0xbd   : > { %2013 = dma.done.wait (%p2550_p7), [#allocation13], 6144  }
  0xbe   : > { %2015 = vsyncadd (%p2550_p7), [#allocation13], 4294961152 }
  0xbf   : > { %2017 = dma.done.wait (%p2550_p7), [#allocation16], 4096  }
  0xc0   : > { %2019 = vsyncadd (%p2550_p7), [#allocation16], 4294963200  ;;  %v2056_v0 = vmov 0.0   ;;  %v528_v1 = vld [vmem:[#allocation9 + $0x80] sm:$0xff]  ;;  %v529_v2 = vld [vmem:[#allocation9 + $0x88] sm:$0xff]  ;;  %s2551_s8 = sld [smem:[#allocation25_spill]] }
  0xc1   : > { %502 = vst [vmem:[#allocation2] sm:$0x1] %v2056_v0  ;;  %503 = vst [vmem:[#allocation3] sm:$0x1] %v2056_v0  ;;  %v512_v3 = vld [vmem:[#allocation9] sm:$0xff]  ;;  %v1488_v4 = vpack.c.bf16 %v529_v2, %v528_v1  ;;  %v513_v5 = vld [vmem:[#allocation9 + $0x8] sm:$0xff] }
  0xc2   : > { %504 = vst [vmem:[#allocation4] sm:$0x3] %v2056_v0  ;;  %505 = vst [vmem:[#allocation5] sm:$0x3] %v2056_v0  ;;  %v530_v6 = vld [vmem:[#allocation9 + $0x90] sm:$0xff]  ;;  %v531_v7 = vld [vmem:[#allocation9 + $0x98] sm:$0xff]  ;;  %v1490_v8 = vpack.c.bf16 %v513_v5, %v512_v3 }
  0xc3   : > { %v1492_v9 = vpack.c.bf16 %v531_v7, %v530_v6  ;;  %v514_v10 = vld [vmem:[#allocation9 + $0x10] sm:$0xff]  ;;  %v515_v11 = vld [vmem:[#allocation9 + $0x18] sm:$0xff]  ;;  %v532_v12 = vld [vmem:[#allocation9 + $0xa0] sm:$0xff]  ;;  %1489 = vmatprep.subr.bf16.mxu0 %v1488_v4  ;;  %s2552_s13 = sld [smem:[#allocation26_spill]]  ;;  %s2553_s10 = sld [smem:[#allocation23_spill]] }
  0xc4   : > { %v533_v13 = vld [vmem:[#allocation9 + $0xa8] sm:$0xff]  ;;  %1491 = vmatpush3.bf16.msra.mxu0 %v1490_v8  ;;  %v1494_v14 = vpack.c.bf16 %v515_v11, %v514_v10  ;;  %v516_v16 = vld [vmem:[#allocation9 + $0x20] sm:$0xff]  ;;  %v534_v18 = vld [vmem:[#allocation9 + $0xb0] sm:$0xff]  ;;  %s2554_s24 = sld [smem:[#allocation27_spill]]  ;;  %s495_s25 = scalar_lea.vmem [#allocation17], %s1264_s11 }
  0xc5   : > { %1493 = vmatprep.subr.bf16.mxu0 %v1492_v9  ;;  %v1496_v15 = vpack.c.bf16 %v533_v13, %v532_v12  ;;  %v517_v17 = vld [vmem:[#allocation9 + $0x28] sm:$0xff]  ;;  %v535_v19 = vld [vmem:[#allocation9 + $0xb8] sm:$0xff]  ;;  %v518_v22 = vld [vmem:[#allocation9 + $0x30] sm:$0xff]  ;;  %s1116_s14 = sshll.u32 %s495_s25, 4  ;;  %s1101_s11 = scalar_lea.sflag [#allocation8], %s2385_s6  ;;  %s2456_s14 = int_to_ptr.vmem [resolvable:$true] %s1116_s14 }
  0xc6   : > { %v1498_v20 = vpack.c.bf16 %v517_v17, %v516_v16  ;;  %v1500_v21 = vpack.c.bf16 %v535_v19, %v534_v18  ;;  %v519_v23 = vld [vmem:[#allocation9 + $0x38] sm:$0xff]  ;;  %v536_v24 = vld [vmem:[#allocation9 + $0xc0] sm:$0xff]  ;;  %v537_v25 = vld [vmem:[#allocation9 + $0xc8] sm:$0xff]  ;;  %s1952_s30 = scalar_lea.vmem %s2456_s14, 256  ;;  %p2556_p5 = scmp.ne.s32.totalorder %s2545_s26, 0 }
  0xc7   : > { %v2410_v26 = vld [vmem:[%s2391_s1] sm:$0xff]  ;;  %v2415_v28 = vld [vmem:[%s2391_s1 + $0x8] sm:$0xff]  ;;  %v1502_v31 = vpack.c.bf16 %v519_v23, %v518_v22  ;;  %v1504_v36 = vpack.c.bf16 %v537_v25, %v536_v24  ;;  %p1953_p6 = scmp.ne.s32.totalorder %s2456_s14, %s1952_s30 }
  0xc8   : > { %1495 = vmatpush3.bf16.msra.mxu0 %v1494_v14  ;;  %v520_v27 = vld [vmem:[#allocation9 + $0x40] sm:$0xff]  ;;  %508 = vst [vmem:[#allocation2 + $0x1] sm:$0xff] %v2410_v26  ;;  %615 = vmatprep.mubr.f32.mxu0 %v2410_v26  ;;  %v649_v30 = vld [vmem:[#allocation11 + $0x88] sm:$0xff]  ;;  %509 = vst [vmem:[#allocation2 + $0x9] sm:$0xff] %v2415_v28 }
  0xc9   : > { %1497 = vmatprep.subr.bf16.mxu0 %v1496_v15  ;;  %v648_v29 = vld [vmem:[#allocation11 + $0x80] sm:$0xff]  ;;  %v521_v32 = vld [vmem:[#allocation9 + $0x48] sm:$0xff]  ;;  %v538_v37 = vld [vmem:[#allocation9 + $0xd0] sm:$0xff]  ;;  %s1282_s15 = sshll.u32 %s2553_s10, 8  ;;  %p1954_p10 = pnand %p1953_p6, %p2556_p5 }
  0xca   : > { %v1520_v33 = vpack.c.bf16 %v649_v30, %v648_v29  ;;  %v632_v34 = vld [vmem:[#allocation11] sm:$0xff]  ;;  %v633_v35 = vld [vmem:[#allocation11 + $0x8] sm:$0xff]  ;;  %v650_v39 = vld [vmem:[#allocation11 + $0x90] sm:$0xff]  ;;  %v1506_v48 = vpack.c.bf16 %v521_v32, %v520_v27 }
  0xcb   : > { %v1522_v38 = vpack.c.bf16 %v633_v35, %v632_v34  ;;  %v651_v40 = vld [vmem:[#allocation11 + $0x98] sm:$0xff]  ;;  %v634_v43 = vld [vmem:[#allocation11 + $0x10] sm:$0xff]  ;;  %v652_v46 = vld [vmem:[#allocation11 + $0xa0] sm:$0xff]  ;;  %p1955_p11 = pneg %p1954_p10 }
  0xcc   : > { %1499 = vmatpush3.bf16.msra.mxu0 %v1498_v20  ;;  %v539_v41 = vld [vmem:[#allocation9 + $0xd8] sm:$0xff]  ;;  %1521 = vmatprep.subr.bf16.mxu1 %v1520_v33  ;;  %v1524_v42 = vpack.c.bf16 %v651_v40, %v650_v39  ;;  %v653_v47 = vld [vmem:[#allocation11 + $0xa8] sm:$0xff]  ;;  %v522_v49 = vld [vmem:[#allocation9 + $0x50] sm:$0xff] }
  0xcd   : > { %1501 = vmatprep.subr.bf16.mxu0 %v1500_v21  ;;  %v635_v44 = vld [vmem:[#allocation11 + $0x18] sm:$0xff]  ;;  %1523 = vmatpush3.bf16.msra.mxu1 %v1522_v38  ;;  %v1528_v50 = vpack.c.bf16 %v653_v47, %v652_v46  ;;  %v636_v51 = vld [vmem:[#allocation11 + $0x20] sm:$0xff]  ;;  %v637_v52 = vld [vmem:[#allocation11 + $0x28] sm:$0xff]  ;;  %v1508_v53 = vpack.c.bf16 %v539_v41, %v538_v37 }
  0xce   : > { %v1526_v45 = vpack.c.bf16 %v635_v44, %v634_v43  ;;  %1525 = vmatprep.subr.bf16.mxu1 %v1524_v42  ;;  %v523_v54 = vld [vmem:[#allocation9 + $0x58] sm:$0xff]  ;;  %v654_v55 = vld [vmem:[#allocation11 + $0xb0] sm:$0xff]  ;;  %v540_v57 = vld [vmem:[#allocation9 + $0xe0] sm:$0xff]  ;;  %v1530_v60 = vpack.c.bf16 %v637_v52, %v636_v51 }
  0xcf   : > { %v655_v56 = vld [vmem:[#allocation11 + $0xb8] sm:$0xff]  ;;  %v541_v58 = vld [vmem:[#allocation9 + $0xe8] sm:$0xff]  ;;  %v510_v59 = vld [vmem:[#allocation2] sm:$0xff]  ;;  %v1510_v61 = vpack.c.bf16 %v523_v54, %v522_v49 }
  0xd0   : > { %1503 = vmatpush3.bf16.msra.mxu0 %v1502_v31  ;;  %850 = vst [vmem:[#allocation2 - $0x7] sm:$0x80] %v2415_v28  ;;  %v1532_v62 = vpack.c.bf16 %v655_v56, %v654_v55  ;;  %v638_v63 = vld [vmem:[#allocation11 + $0x30] sm:$0xff]  ;;  %v639_v0 = vld [vmem:[#allocation11 + $0x38] sm:$0xff]  ;;  %v1512_v1 = vpack.c.bf16 %v541_v58, %v540_v57  ;;  %v524_v2 = vld [vmem:[#allocation9 + $0x60] sm:$0xff] }
  0xd1   : > { %1505 = vmatprep.subr.bf16.mxu0 %v1504_v36  ;;  %1527 = vmatpush3.bf16.msra.mxu1 %v1526_v45  ;;  %v525_v3 = vld [vmem:[#allocation9 + $0x68] sm:$0xff]  ;;  %v542_v4 = vld [vmem:[#allocation9 + $0xf0] sm:$0xff]  ;;  %v543_v5 = vld [vmem:[#allocation9 + $0xf8] sm:$0xff]  ;;  %v1534_v6 = vpack.c.bf16 %v639_v0, %v638_v63 }
  0xd2   : > { %1529 = vmatprep.subr.bf16.mxu1 %v1528_v50  ;;  %v1514_v7 = vpack.c.bf16 %v525_v3, %v524_v2  ;;  %v1516_v8 = vpack.c.bf16 %v543_v5, %v542_v4  ;;  %v526_v9 = vld [vmem:[#allocation9 + $0x70] sm:$0xff]  ;;  %v527_v10 = vld [vmem:[#allocation9 + $0x78] sm:$0xff]  ;;  %v748_v11 = vld [vmem:[#allocation12] sm:$0xff] }
  0xd3   : > { %v749_v12 = vld [vmem:[#allocation12 + $0x8] sm:$0xff]  ;;  %v1518_v13 = vpack.c.bf16 %v527_v10, %v526_v9  ;;  %v750_v15 = vld [vmem:[#allocation12 + $0x10] sm:$0xff]  ;;  %v751_v16 = vld [vmem:[#allocation12 + $0x18] sm:$0xff] }
  0xd4   : > { %1507 = vmatpush3.bf16.msra.mxu0 %v1506_v48  ;;  %v1552_v14 = vpack.c.bf16 %v749_v12, %v748_v11  ;;  %v1556_v17 = vpack.c.bf16 %v751_v16, %v750_v15  ;;  %v752_v18 = vld [vmem:[#allocation12 + $0x20] sm:$0xff]  ;;  %v753_v19 = vld [vmem:[#allocation12 + $0x28] sm:$0xff]  ;;  %v754_v22 = vld [vmem:[#allocation12 + $0x30] sm:$0xff] }
  0xd5   : > { %1509 = vmatprep.subr.bf16.mxu0 %v1508_v53  ;;  %1531 = vmatpush3.bf16.msra.mxu1 %v1530_v60  ;;  %v511_v20 = vld [vmem:[#allocation2 + $0x8] sm:$0xff]  ;;  %v1560_v21 = vpack.c.bf16 %v753_v19, %v752_v18  ;;  %v755_v23 = vld [vmem:[#allocation12 + $0x38] sm:$0xff]  ;;  %v656_v25 = vld [vmem:[#allocation11 + $0xc0] sm:$0xff] }
  0xd6   : > { %1533 = vmatprep.subr.bf16.mxu1 %v1532_v62  ;;  %v1564_v24 = vpack.c.bf16 %v755_v23, %v754_v22  ;;  %v657_v27 = vld [vmem:[#allocation11 + $0xc8] sm:$0xff]  ;;  %v640_v30 = vld [vmem:[#allocation11 + $0x40] sm:$0xff]  ;;  %v658_v36 = vld [vmem:[#allocation11 + $0xd0] sm:$0xff] }
  0xd7   : > { %v1536_v29 = vpack.c.bf16 %v657_v27, %v656_v25  ;;  %v641_v31 = vld [vmem:[#allocation11 + $0x48] sm:$0xff]  ;;  %v756_v33 = vld [vmem:[#allocation12 + $0x40] sm:$0xff]  ;;  %v659_v37 = vld [vmem:[#allocation11 + $0xd8] sm:$0xff] }
  0xd8   : > { %1511 = vmatpush3.bf16.msra.mxu0 %v1510_v61  ;;  %v1538_v32 = vpack.c.bf16 %v641_v31, %v640_v30  ;;  %v757_v34 = vld [vmem:[#allocation12 + $0x48] sm:$0xff]  ;;  %v1540_v38 = vpack.c.bf16 %v659_v37, %v658_v36  ;;  %v643_v39 = vld [vmem:[#allocation11 + $0x58] sm:$0xff]  ;;  %v758_v41 = vld [vmem:[#allocation12 + $0x50] sm:$0xff] }
  0xd9   : > { %1513 = vmatprep.subr.bf16.mxu0 %v1512_v1  ;;  %1535 = vmatpush3.bf16.msra.mxu1 %v1534_v6  ;;  %v1568_v35 = vpack.c.bf16 %v757_v34, %v756_v33  ;;  %v759_v42 = vld [vmem:[#allocation12 + $0x58] sm:$0xff]  ;;  %v660_v44 = vld [vmem:[#allocation11 + $0xe0] sm:$0xff]  ;;  %v661_v45 = vld [vmem:[#allocation11 + $0xe8] sm:$0xff] }
  0xda   : > { %1537 = vmatprep.subr.bf16.mxu1 %v1536_v29  ;;  %v1572_v43 = vpack.c.bf16 %v759_v42, %v758_v41  ;;  %v1544_v46 = vpack.c.bf16 %v661_v45, %v660_v44  ;;  %v644_v47 = vld [vmem:[#allocation11 + $0x60] sm:$0xff]  ;;  %v645_v48 = vld [vmem:[#allocation11 + $0x68] sm:$0xff]  ;;  %v662_v53 = vld [vmem:[#allocation11 + $0xf0] sm:$0xff] }
  0xdb   : > { %v1546_v49 = vpack.c.bf16 %v645_v48, %v644_v47  ;;  %v760_v50 = vld [vmem:[#allocation12 + $0x60] sm:$0xff]  ;;  %v761_v51 = vld [vmem:[#allocation12 + $0x68] sm:$0xff]  ;;  %v663_v54 = vld [vmem:[#allocation11 + $0xf8] sm:$0xff] }
  0xdc   : > { %1515 = vmatpush3.bf16.msra.mxu0 %v1514_v7  ;;  %v1576_v52 = vpack.c.bf16 %v761_v51, %v760_v50  ;;  %v1548_v55 = vpack.c.bf16 %v663_v54, %v662_v53  ;;  %v646_v56 = vld [vmem:[#allocation11 + $0x70] sm:$0xff]  ;;  %v647_v57 = vld [vmem:[#allocation11 + $0x78] sm:$0xff]  ;;  %v872_v62 = vld [vmem:[#allocation14 + $0x80] sm:$0xff] }
  0xdd   : > { %1517 = vmatprep.subr.bf16.mxu0 %v1516_v8  ;;  %1539 = vmatpush3.bf16.msra.mxu1 %v1538_v32  ;;  %v1550_v58 = vpack.c.bf16 %v647_v57, %v646_v56  ;;  %v763_v60 = vld [vmem:[#allocation12 + $0x78] sm:$0xff]  ;;  %v873_v63 = vld [vmem:[#allocation14 + $0x88] sm:$0xff]  ;;  %v1271_v3 = vld [vmem:[%s2513_s2] ss:$0 sm:$0xff] }
  0xde   : > { %1541 = vmatprep.subr.bf16.mxu1 %v1540_v38  ;;  %v1584_v0 = vpack.c.bf16 %v873_v63, %v872_v62  ;;  %v856_v11 = vld [vmem:[#allocation14] sm:$0xff]  ;;  %v857_v12 = vld [vmem:[#allocation14 + $0x8] sm:$0xff]  ;;  %v859_v18 = vld [vmem:[#allocation14 + $0x18] sm:$0xff] }
  0xdf   : > { %v1586_v15 = vpack.c.bf16 %v857_v12, %v856_v11  ;;  %v861_v25 = vld [vmem:[#allocation14 + $0x28] sm:$0xff]  ;;  %v878_v30 = vld [vmem:[#allocation14 + $0xb0] sm:$0xff]  ;;  %v879_v31 = vld [vmem:[#allocation14 + $0xb8] sm:$0xff] }
  0xe0   : > { %1519 = vmatpush3.bf16.msra.mxu0 %v1518_v13  ;;  %v874_v13 = vld [vmem:[#allocation14 + $0x90] sm:$0xff]  ;;  %v1596_v32 = vpack.c.bf16 %v879_v31, %v878_v30  ;;  %v863_v34 = vld [vmem:[#allocation14 + $0x38] sm:$0xff]  ;;  %v880_v36 = vld [vmem:[#allocation14 + $0xc0] sm:$0xff] }
  0xe1   : > { %1553 = vmatprep.subr.bf16.mxu0 %v1552_v14  ;;  %v862_v33 = vld [vmem:[#allocation14 + $0x30] sm:$0xff]  ;;  %v881_v37 = vld [vmem:[#allocation14 + $0xc8] sm:$0xff]  ;;  %v883_v44 = vld [vmem:[#allocation14 + $0xd8] sm:$0xff] }
  0xe2   : > { %v1600_v38 = vpack.c.bf16 %v881_v37, %v880_v36  ;;  %v867_v47 = vld [vmem:[#allocation14 + $0x58] sm:$0xff]  ;;  %v885_v50 = vld [vmem:[#allocation14 + $0xe8] sm:$0xff]  ;;  %v976_v63 = vld [vmem:[#allocation15] sm:$0xff] }
  0xe3   : > { %616 = vmatmul.mubr.f32.vlgmr.msra.gmra.mrb[0].mxu0 %v510_v59  ;;  %v762_v59 = vld [vmem:[#allocation12 + $0x70] sm:$0xff]  ;;  %v869_v53 = vld [vmem:[#allocation14 + $0x68] sm:$0xff]  ;;  %v887_v56 = vld [vmem:[#allocation14 + $0xf8] sm:$0xff] }
  0xe4   : > { %620 = vmatprep.mubr.f32.mxu0 %v2415_v28  ;;  %1555 = vmatpush3.bf16.msra.mxu0 %v1552_v14  ;;  %v1580_v61 = vpack.c.bf16 %v763_v60, %v762_v59  ;;  %v875_v14 = vld [vmem:[#allocation14 + $0x98] sm:$0xff]  ;;  %v993_v62 = vld [vmem:[#allocation15 + $0x88] sm:$0xff]  ;;  %v980_v11 = vld [vmem:[#allocation15 + $0x20] sm:$0xff] }
  0xe5   : > { %1557 = vmatprep.subr.bf16.mxu0 %v1556_v17  ;;  %v1588_v16 = vpack.c.bf16 %v875_v14, %v874_v13  ;;  %v871_v59 = vld [vmem:[#allocation14 + $0x78] sm:$0xff]  ;;  %v981_v12 = vld [vmem:[#allocation15 + $0x28] sm:$0xff]  ;;  %v998_v13 = vld [vmem:[#allocation15 + $0xb0] sm:$0xff] }
  0xe6   : > { %v999_v14 = vld [vmem:[#allocation15 + $0xb8] sm:$0xff] }
  0xe7   : > { %621 = vmatmul.mubr.f32.gmra.mrb[2].mxu0 %v511_v20  ;;  %v876_v20 = vld [vmem:[#allocation14 + $0xa0] sm:$0xff] }
  0xe8   : > { %1559 = vmatpush3.bf16.msra.mxu0 %v1556_v17  ;;  %1485 = vmatprep.mubr.f32.mxu0 %v2410_v26  ;;  %v642_v26 = vld [vmem:[#allocation11 + $0x50] sm:$0xff] }
  0xe9   : > { %1561 = vmatprep.subr.bf16.mxu0 %v1560_v21  ;;  %v1542_v40 = vpack.c.bf16 %v643_v39, %v642_v26  ;;  %v858_v17 = vld [vmem:[#allocation14 + $0x10] sm:$0xff]  ;;  %v864_v26 = vld [vmem:[#allocation14 + $0x40] sm:$0xff]  ;;  %v865_v39 = vld [vmem:[#allocation14 + $0x48] sm:$0xff] }
  0xea   : > { %v1590_v22 = vpack.c.bf16 %v859_v18, %v858_v17  ;;  %v1602_v41 = vpack.c.bf16 %v865_v39, %v864_v26  ;;  %v982_v17 = vld [vmem:[#allocation15 + $0x30] sm:$0xff]  ;;  %v983_v18 = vld [vmem:[#allocation15 + $0x38] sm:$0xff] }
  0xeb   : > { %1543 = vmatpush3.bf16.msra.mxu1 %v1542_v40 }
  0xec   : > { %1563 = vmatpush3.bf16.msra.mxu0 %v1560_v21  ;;  %1545 = vmatprep.subr.bf16.mxu1 %v1544_v46  ;;  %v877_v21 = vld [vmem:[#allocation14 + $0xa8] sm:$0xff]  ;;  %v866_v46 = vld [vmem:[#allocation14 + $0x50] sm:$0xff] }
  0xed   : > { %1565 = vmatprep.subr.bf16.mxu0 %v1564_v24  ;;  %v1592_v23 = vpack.c.bf16 %v877_v21, %v876_v20  ;;  %v1606_v48 = vpack.c.bf16 %v867_v47, %v866_v46  ;;  %v1272_v21 = vld [vmem:[%s2515_s4] ss:$0 sm:$0xff]  ;;  %v1002_v47 = vld [vmem:[#allocation15 + $0xd0] sm:$0xff] }
  0xef   : > { %1547 = vmatpush3.bf16.msra.mxu1 %v1546_v49  ;;  %v884_v49 = vld [vmem:[#allocation14 + $0xe0] sm:$0xff] }
  0xf0   : > { %1567 = vmatpush3.bf16.msra.mxu0 %v1564_v24  ;;  %1549 = vmatprep.subr.bf16.mxu1 %v1548_v55  ;;  %v860_v24 = vld [vmem:[#allocation14 + $0x20] sm:$0xff]  ;;  %v1608_v51 = vpack.c.bf16 %v885_v50, %v884_v49  ;;  %v886_v55 = vld [vmem:[#allocation14 + $0xf0] sm:$0xff] }
  0xf1   : > { %1569 = vmatprep.subr.bf16.mxu0 %v1568_v35  ;;  %v1594_v29 = vpack.c.bf16 %v861_v25, %v860_v24  ;;  %v1612_v57 = vpack.c.bf16 %v887_v56, %v886_v55  ;;  %v986_v50 = vld [vmem:[#allocation15 + $0x50] sm:$0xff]  ;;  %v988_v56 = vld [vmem:[#allocation15 + $0x60] sm:$0xff] }
  0xf3   : > { %1551 = vmatpush3.bf16.msra.mxu1 %v1550_v58  ;;  %v870_v58 = vld [vmem:[#allocation14 + $0x70] sm:$0xff] }
  0xf4   : > { %1571 = vmatpush3.bf16.msra.mxu0 %v1568_v35  ;;  %1585 = vmatprep.subr.bf16.mxu1 %v1584_v0  ;;  %v1598_v35 = vpack.c.bf16 %v863_v34, %v862_v33  ;;  %v1614_v60 = vpack.c.bf16 %v871_v59, %v870_v58  ;;  %v1006_v59 = vld [vmem:[#allocation15 + $0xf0] sm:$0xff] }
  0xf5   : > { %1573 = vmatprep.subr.bf16.mxu0 %v1572_v43 }
  0xf8   : > { %1575 = vmatpush3.bf16.msra.mxu0 %v1572_v43  ;;  %v882_v43 = vld [vmem:[#allocation14 + $0xd0] sm:$0xff] }
  0xf9   : > { %1577 = vmatprep.subr.bf16.mxu0 %v1576_v52  ;;  %v1604_v45 = vpack.c.bf16 %v883_v44, %v882_v43  ;;  %v984_v44 = vld [vmem:[#allocation15 + $0x40] sm:$0xff] }
  0xfc   : > { %1579 = vmatpush3.bf16.msra.mxu0 %v1576_v52  ;;  %v868_v52 = vld [vmem:[#allocation14 + $0x60] sm:$0xff] }
  0xfd   : > { %1581 = vmatprep.subr.bf16.mxu0 %v1580_v61  ;;  %v1610_v54 = vpack.c.bf16 %v869_v53, %v868_v52  ;;  %v1004_v53 = vld [vmem:[#allocation15 + $0xe0] sm:$0xff] }
 0x100   : > { %1583 = vmatpush3.bf16.msra.mxu0 %v1580_v61  ;;  %v992_v61 = vld [vmem:[#allocation15 + $0x80] sm:$0xff] }
 0x101   : > { %v1616_v0 = vpack.c.bf16 %v993_v62, %v992_v61  ;;  %v990_v62 = vld [vmem:[#allocation15 + $0x70] sm:$0xff] }
 0x103   : > { %1486 = vmatmul.mubr.f32.vlgmr.msra.gmra.mrb[4].mxu0 %v2415_v28  ;;  %1617 = vmatprep.subr.bf16.mxu0 %v1616_v0 }
 0x1b6   : > { %v1315_v1 = vpop.f32.mrb[0].mxu0 }
 0x1b7   : > { %v1316_v2 = vpop.f32.mrb[1].mxu0 }
 0x1b8   : > { %v1317_v4 = vadd.f32 %v1316_v2, %v1315_v1  ;;  %v977_v1 = vld [vmem:[#allocation15 + $0x8] sm:$0xff]  ;;  %v994_v2 = vld [vmem:[#allocation15 + $0x90] sm:$0xff] }
 0x1ba   : > { %v1318_v5 = vpop.f32.mrb[2].mxu0  ;;  %v618_v6 = vadd.f32 %v1317_v4, %v1271_v3  ;;  %v1618_v4 = vpack.c.bf16 %v977_v1, %v976_v63  ;;  %v991_v63 = vld [vmem:[#allocation15 + $0x78] sm:$0xff] }
 0x1bb   : > { %v1319_v7 = vpop.f32.mrb[3].mxu0 }
 0x1bc   : > { %v1320_v8 = vadd.f32 %v1319_v7, %v1318_v5  ;;  %v626_v9 = vmax.f32 %v618_v6, 0.0  ;;  %v978_v6 = vld [vmem:[#allocation15 + $0x10] sm:$0xff]  ;;  %v979_v7 = vld [vmem:[#allocation15 + $0x18] sm:$0xff]  ;;  %1619 = vmatpush3.bf16.msra.mxu0 %v1618_v4 }
 0x1be   : > { %v623_v10 = vadd.f32 %v1320_v8, %v1271_v3  ;;  %628 = vst [vmem:[#allocation3 + $0x1] sm:$0xff] %v626_v9  ;;  %735 = vmatprep.mubr.f32.mxu1 %v626_v9  ;;  %v995_v3 = vld [vmem:[#allocation15 + $0x98] sm:$0xff]  ;;  %v996_v8 = vld [vmem:[#allocation15 + $0xa0] sm:$0xff]  ;;  %v997_v9 = vld [vmem:[#allocation15 + $0xa8] sm:$0xff] }
 0x1bf   : > { %v1620_v5 = vpack.c.bf16 %v995_v3, %v994_v2  ;;  %v1274_v2 = vld [vmem:[%s2552_s13] ss:$0 sm:$0xff]  ;;  %s2057_s13 = smov [#allocation17]  }
 0x1c0   : > { %v627_v28 = vmax.f32 %v623_v10, 0.0  ;;  %v1622_v10 = vpack.c.bf16 %v979_v7, %v978_v6  ;;  %s1956_s10 = sshll.u32 %s2057_s13, 4  ;;  %s1957_s10 = int_to_ptr.vmem [resolvable:$false] %s1956_s10 }
 0x1c1   : > { %1621 = vmatprep.subr.bf16.mxu0 %v1620_v5  ;;  %s1958_s23 = scalar_lea.vmem %s1957_s10, 512  ;;  %p1959_p2 = scmp.lt.s32.totalorder %s2456_s14, %s1957_s10 }
 0x1c2   : > { %629 = vst [vmem:[#allocation3 + $0x9] sm:$0xff] %v627_v28  ;;  %1623 = vmatpush3.bf16.msra.mxu0 %v1622_v10  ;;  %p1960_p4 = scmp.lt.s32.totalorder %s1958_s23, %s1952_s30 }
 0x1c4   : > { %p1961_p9 = por %p1960_p4, %p1959_p2 }
 0x1c5   : > { %v630_v19 = vld [vmem:[#allocation3] sm:$0xff] }
 0x1c6   : > { %736 = vmatmul.mubr.f32.vlgmr.msra.gmra.mrb[0].mxu1 %v630_v19  ;;  %851 = vst [vmem:[#allocation3 - $0x7] sm:$0x80] %v627_v28  ;;  %v1630_v19 = vpack.c.bf16 %v983_v18, %v982_v17  ;;  %p1962_p8 = pnand %p1961_p9, %p1955_p11 }
 0x1c7   : > { %740 = vmatprep.mubr.f32.mxu1 %v627_v28  ;;  %1587 = vmatpush3.bf16.msra.mxu1 %v1586_v15  ;;  %v1624_v28 = vpack.c.bf16 %v997_v9, %v996_v8  ;;  %v1626_v15 = vpack.c.bf16 %v981_v12, %v980_v11 }
 0x1c8   : > { %1589 = vmatprep.subr.bf16.mxu1 %v1588_v16  ;;  %v1628_v16 = vpack.c.bf16 %v999_v14, %v998_v13  ;;  %v1275_v14 = vld [vmem:[%s2554_s24] ss:$0 sm:$0xff] }
 0x1c9   : > { %v631_v27 = vld [vmem:[#allocation3 + $0x8] sm:$0xff]  ;;  %1625 = vmatprep.subr.bf16.mxu0 %v1624_v28 }
 0x1ca   : > { %741 = vmatmul.mubr.f32.gmra.mrb[2].mxu1 %v631_v27  ;;  %1627 = vmatpush3.bf16.msra.mxu0 %v1626_v15 }
 0x1cb   : > { %1591 = vmatpush3.bf16.msra.mxu1 %v1590_v22  ;;  %1629 = vmatprep.subr.bf16.mxu0 %v1628_v16 }
 0x1cc   : > { %1593 = vmatprep.subr.bf16.mxu1 %v1592_v23  ;;  %v1273_v23 = vld [vmem:[%s2551_s8] ss:$0 sm:$0xff]  ;;  %s2555_s8 = sld [smem:[#allocation28_spill]] }
 0x1ce   : > { %1631 = vmatpush3.bf16.msra.mxu0 %v1630_v19 }
 0x1cf   : > { %1595 = vmatpush3.bf16.msra.mxu1 %v1594_v29 }
 0x1d0   : > { %1597 = vmatprep.subr.bf16.mxu1 %v1596_v32 }
 0x1d2   : > { %s2462_s27 = scalar_lea.hbm %s2555_s8, %s1282_s15 }
 0x1d3   : > { %1599 = vmatpush3.bf16.msra.mxu1 %v1598_v35 }
 0x1d4   : > { %1601 = vmatprep.subr.bf16.mxu1 %v1600_v38 }
 0x1d6   : > { %v2425_v40 = vpop.f32.mrb[4].mxu0 }
 0x1d7   : > { %v2427_v42 = vpop.f32.mrb[5].mxu0  ;;  %1603 = vmatpush3.bf16.msra.mxu1 %v1602_v41  ;;  %v843_v35 = vadd.f32 %v2425_v40, %v1273_v23  ;;  %v1000_v41 = vld [vmem:[#allocation15 + $0xc0] sm:$0xff] }
 0x1d8   : > { %1605 = vmatprep.subr.bf16.mxu1 %v1604_v45  ;;  %v838_v29 = vadd.f32 %v1273_v23, %v2427_v42  ;;  %v1001_v42 = vld [vmem:[#allocation15 + $0xc8] sm:$0xff] }
 0x1d9   : > { %v1632_v43 = vpack.c.bf16 %v1001_v42, %v1000_v41  ;;  %v985_v45 = vld [vmem:[#allocation15 + $0x48] sm:$0xff] }
 0x1da   : > { %v1634_v46 = vpack.c.bf16 %v985_v45, %v984_v44 }
 0x1db   : > { %1607 = vmatpush3.bf16.msra.mxu1 %v1606_v48  ;;  %1633 = vmatprep.subr.bf16.mxu0 %v1632_v43  ;;  %v1003_v48 = vld [vmem:[#allocation15 + $0xd8] sm:$0xff] }
 0x1dc   : > { %1609 = vmatprep.subr.bf16.mxu1 %v1608_v51  ;;  %1635 = vmatpush3.bf16.msra.mxu0 %v1634_v46  ;;  %v1636_v49 = vpack.c.bf16 %v1003_v48, %v1002_v47  ;;  %v987_v51 = vld [vmem:[#allocation15 + $0x58] sm:$0xff] }
 0x1dd   : > { %v1638_v52 = vpack.c.bf16 %v987_v51, %v986_v50 }
 0x1de   : > { %1637 = vmatprep.subr.bf16.mxu0 %v1636_v49 }
 0x1df   : > { %1611 = vmatpush3.bf16.msra.mxu1 %v1610_v54  ;;  %v1005_v54 = vld [vmem:[#allocation15 + $0xe8] sm:$0xff] }
 0x1e0   : > { %1613 = vmatprep.subr.bf16.mxu1 %v1612_v57  ;;  %1639 = vmatpush3.bf16.msra.mxu0 %v1638_v52  ;;  %v1640_v55 = vpack.c.bf16 %v1005_v54, %v1004_v53  ;;  %v989_v57 = vld [vmem:[#allocation15 + $0x68] sm:$0xff] }
 0x1e1   : > { %v1642_v58 = vpack.c.bf16 %v989_v57, %v988_v56 }
 0x1e2   : > { %1641 = vmatprep.subr.bf16.mxu0 %v1640_v55 }
 0x1e3   : > { %1615 = vmatpush3.bf16.msra.mxu1 %v1614_v60  ;;  %v1007_v60 = vld [vmem:[#allocation15 + $0xf8] sm:$0xff] }
 0x1e4   : > { %1648 = vmatprep.subr.bf16.mxu1 %v1616_v0  ;;  %1643 = vmatpush3.bf16.msra.mxu0 %v1642_v58  ;;  %v1644_v61 = vpack.c.bf16 %v1007_v60, %v1006_v59  ;;  %v1646_v0 = vpack.c.bf16 %v991_v63, %v990_v62 }
 0x1e6   : > { %1645 = vmatprep.subr.bf16.mxu0 %v1644_v61 }
 0x1e8   : > { %1647 = vmatpush3.bf16.msra.mxu0 %v1646_v0 }
 0x299   : > { %v1353_v20 = vpop.f32.mrb[0].mxu1 }
 0x29a   : > { %v1354_v22 = vpop.f32.mrb[1].mxu1 }
 0x29b   : > { %v1355_v24 = vadd.f32 %v1354_v22, %v1353_v20 }
 0x29d   : > { %v738_v25 = vadd.f32 %v1355_v24, %v1272_v21  ;;  %v1356_v27 = vpop.f32.mrb[2].mxu1 }
 0x29e   : > { %v1357_v30 = vpop.f32.mrb[3].mxu1 }
 0x29f   : > { %v746_v31 = vmax.f32 %v738_v25, 0.0  ;;  %v1358_v32 = vadd.f32 %v1357_v30, %v1356_v27 }
 0x2a1   : > { %v846_v33 = vadd.f32 %v838_v29, %v746_v31  ;;  %v743_v34 = vadd.f32 %v1358_v32, %v1272_v21 }
 0x2a3   : > { %v2437_v36 = vmax.f32 %v846_v33, 0.0  ;;  %v747_v37 = vmax.f32 %v743_v34, 0.0 }
 0x2a5   : > { %852 = vst [vmem:[#allocation4 + $0x2] sm:$0xff] %v2437_v36  ;;  %v847_v38 = vadd.f32 %v843_v35, %v747_v37  ;;  %959 = vmatprep.mubr.f32.mxu1 %v2437_v36 }
 0x2a7   : > { %v2441_v26 = vmax.f32 %v847_v38, 0.0 }
 0x2a9   : > { %853 = vst [vmem:[#allocation4 + $0xa] sm:$0xff] %v2441_v26 }
 0x2ac   : > { %v854_v39 = vld [vmem:[#allocation4] sm:$0xff] }
 0x2ad   : > { %960 = vmatmul.mubr.f32.vlgmr.msra.gmra.mrb[4].mxu1 %v854_v39  ;;  %1096 = vst [vmem:[#allocation4 - $0x6] sm:$0xc0] %v2441_v26 }
 0x2ae   : > { %964 = vmatprep.mubr.f32.mxu1 %v2441_v26  ;;  %1656 = vmatpush3.bf16.msra.mxu1 %v1618_v4 }
 0x2af   : > { %1649 = vmatprep.subr.bf16.mxu1 %v1620_v5 }
 0x2b0   : > { %v855_v40 = vld [vmem:[#allocation4 + $0x8] sm:$0xff] }
 0x2b1   : > { %965 = vmatmul.mubr.f32.gmra.mrb[6].mxu1 %v855_v40 }
 0x2b2   : > { %1657 = vmatpush3.bf16.msra.mxu1 %v1622_v10 }
 0x2b3   : > { %1650 = vmatprep.subr.bf16.mxu1 %v1624_v28 }
 0x2b6   : > { %1658 = vmatpush3.bf16.msra.mxu1 %v1626_v15 }
 0x2b7   : > { %1651 = vmatprep.subr.bf16.mxu1 %v1628_v16 }
 0x2ba   : > { %1659 = vmatpush3.bf16.msra.mxu1 %v1630_v19 }
 0x2bb   : > { %1652 = vmatprep.subr.bf16.mxu1 %v1632_v43 }
 0x2be   : > { %1660 = vmatpush3.bf16.msra.mxu1 %v1634_v46 }
 0x2bf   : > { %1653 = vmatprep.subr.bf16.mxu1 %v1636_v49 }
 0x2c2   : > { %1661 = vmatpush3.bf16.msra.mxu1 %v1638_v52 }
 0x2c3   : > { %1654 = vmatprep.subr.bf16.mxu1 %v1640_v55 }
 0x2c6   : > { %1662 = vmatpush3.bf16.msra.mxu1 %v1642_v58 }
 0x2c7   : > { %1655 = vmatprep.subr.bf16.mxu1 %v1644_v61 }
 0x2ca   : > { %1663 = vmatpush3.bf16.msra.mxu1 %v1646_v0 }
 0x380   : > { %v1409_v1 = vpop.f32.mrb[4].mxu1 }
 0x381   : > { %v1410_v3 = vpop.f32.mrb[5].mxu1 }
 0x382   : > { %v1411_v4 = vadd.f32 %v1410_v3, %v1409_v1 }
 0x384   : > { %v962_v5 = vadd.f32 %v1411_v4, %v1274_v2  ;;  %v1412_v6 = vpop.f32.mrb[6].mxu1 }
 0x385   : > { %v1413_v7 = vpop.f32.mrb[7].mxu1 }
 0x386   : > { %v970_v8 = vmax.f32 %v962_v5, 0.0  ;;  %v1414_v9 = vadd.f32 %v1413_v7, %v1412_v6 }
 0x388   : > { %972 = vst [vmem:[#allocation5 + $0x2] sm:$0xff] %v970_v8  ;;  %v967_v10 = vadd.f32 %v1414_v9, %v1274_v2  ;;  %1079 = vmatprep.mubr.f32.mxu0 %v970_v8 }
 0x38a   : > { %v971_v28 = vmax.f32 %v967_v10, 0.0 }
 0x38c   : > { %973 = vst [vmem:[#allocation5 + $0xa] sm:$0xff] %v971_v28  ;;  %1084 = vmatprep.mubr.f32.mxu1 %v971_v28 }
 0x38f   : > { %v974_v11 = vld [vmem:[#allocation5] sm:$0xff] }
 0x390   : > { %1080 = vmatmul.mubr.f32.vlgmr.msra.gmra.mrb[6].mxu0 %v974_v11  ;;  %1097 = vst [vmem:[#allocation5 - $0x6] sm:$0xc0] %v971_v28 }
 0x393   : > { %v975_v12 = vld [vmem:[#allocation5 + $0x8] sm:$0xff] }
 0x394   : > { %1085 = vmatmul.mubr.f32.vlgmr.msra.gmra.mrb[8].mxu1 %v975_v12 }
 0x463   : > { %v1447_v13 = vpop.f32.mrb[6].mxu0 }
 0x464   : > { %v1448_v15 = vpop.f32.mrb[7].mxu0 }
 0x465   : > { %v1449_v16 = vadd.f32 %v1448_v15, %v1447_v13 }
 0x467   : > { %v1082_v17 = vadd.f32 %v1449_v16, %v1275_v14  ;;  %v1450_v18 = vpop.f32.mrb[8].mxu1 }
 0x468   : > { %v1451_v19 = vpop.f32.mrb[9].mxu1 }
 0x469   : > { %v1090_v20 = vmax.f32 %v1082_v17, 0.0  ;;  %v1452_v21 = vadd.f32 %v1451_v19, %v1450_v18 }
 0x46b   : > { %v1092_v22 = vadd.f32 %v1090_v20, %v2437_v36  ;;  %v1087_v23 = vadd.f32 %v1452_v21, %v1275_v14 }
 0x46d   : > { %v1094_v24 = vmax.f32 %v1092_v22, 0.0  ;;  %v1091_v25 = vmax.f32 %v1087_v23, 0.0 }
 0x46f   : > { %1098 = vst [vmem:[%s495_s25] sm:$0xff] %v1094_v24  ;;  %v1093_v27 = vadd.f32 %v1091_v25, %v2441_v26 }
 0x471   : > { %v1095_v29 = vmax.f32 %v1093_v27, 0.0 }
 0x473   : > { %1099 = vst [vmem:[%s495_s25 + $0x8] sm:$0xff] %v1095_v29 }
 0x474   : > { %1965 = shalt.err (!%p1962_p8)
}
 0x475   : > { %s1966_s1 = scalar_lea.hbm %s2462_s27, 256  ;;  %s1970_s15 = scalar_lea.hbm %s2555_s8, 512 }
 0x476   : > { %p1967_p3 = scmp.ne.s32.totalorder %s2462_s27, %s1966_s1  ;;  %p1971_p0 = scmp.lt.u32.totalorder %s2462_s27, %s2555_s8 }
 0x477   : > { %p1972_p1 = scmp.lt.u32.totalorder %s1970_s15, %s1966_s1  ;;  %p1974_p6 = scmp.lt.u32.totalorder %s1966_s1, %s2462_s27 }
 0x478   : > { %p1968_p12 = pnand %p1967_p3, %p2556_p5 }
 0x479   : > { %p1973_p7 = por %p1972_p1, %p1971_p0 }
 0x47a   : > { %p1969_p13 = pneg %p1968_p12 }
 0x47b   : > { %p1975_p10 = por %p1974_p6, %p1973_p7 }
 0x47d   : > { %p1976_p11 = pnand %p1975_p10, %p1969_p13 }
 0x47f   : > { %1979 = shalt.err (!%p1976_p11)
}
 0x480   : > { %s2058_s30 = smov 128   ;;  %s2059_s13 = smov 8  }
 0x481   : > { %1686 = dma.vmem_to_hbm [thread:$0]  (%p2556_p5), %s2456_s14, 256, %s2462_s27, %s1101_s11, %s2058_s30, %s2058_s30, %s2059_s13  }
 0x482 PF: > { %s1131_s10 = sand.u32 1, %s2026_s17   ;;  %p2557_p2 = scmp.ne.s32.totalorder %s2546_s12, 0 }
 0x483   : > { %p2558_p4 = scmp.ge.s32.totalorder %s2046_s22, 2  ;;  %s1132_s23 = scalar_lea.sflag [#allocation8], %s1131_s10 }
 0x485   : > { %p1709_p9 = pnand %p2558_p4, %p2557_p2 }
 0x487   : > { %2021 = dma.done.wait (!%p1709_p9), %s1132_s23, 256  }
 0x488   : > { %2023 = vsyncadd (!%p1709_p9), %s1132_s23, 4294967040  ;;  %s30_s22 = sadd.s32 1, %s2046_s22   ;;  %s2559_s17 = smov %s2030_s18 }
 0x489   : > { %p27_p8 = scmp.ge.s32.totalorder %s30_s22, 4   ;;  %s2560_s18 = smov %s2034_s19 }
 0x48a   : > { %s2561_s19 = smov %s2330_s29  ;;  %s2562_s20 = smov %s2042_s21 }
 0x48b   : > { %s2563_s21 = smov %s2565_s28  ;;  %29 = sbr.rel (!%p27_p8) target bundleno = 15 (0xf), region = 133 }
 0x492   :  { %1137 = vsyncpa [#allocation7], 1 }
 0x493   :  { %1139 = vsyncpa [#allocation7 + $0x1], 1 }
 0x494   :  { %1140 = vsyncpa [#allocation10], 1 }
 0x495   :  { %1141 = vsyncpa [#allocation13], 1 }
 0x496   :  { %1142 = vsyncpa [#allocation16], 1 }
 0x497   :  { %1143 = vsyncpa [#allocation8], 1 }
 0x498   :  { %1145 = vsyncpa [#allocation8 + $0x1], 1 }

</bundles_post_ra>
